<compile_context>
chip_gen: v6e
topology: v6e:2x2x1
jax: 0.10.0
libtpu: 0.0.40
codegen_flags: <defaults>
</compile_context>

<pallas_src>
import functools

import jax
import jax.numpy as jnp
from jax import lax
from jax.experimental import pallas as pl
from jax.experimental.pallas import tpu as pltpu


def _cpce_kernel(seed_ref, logits_ref, tgt_ref,           # inputs
                 mle_out_ref, cus_out_ref,                # outputs (per-split)
                 seen_ref, mle_acc, cus_acc, tril_ref,    # scratch
                 *, padding_idx, n_valid, rows_per_split):
    h = pl.program_id(0)           # split index (per-TensorCore on multi-TC parts)
    i = pl.program_id(1)           # sequential row-tile index within the split
    nsteps = pl.num_programs(1)
    TN, V = logits_ref.shape

    @pl.when(i == 0)
    def _init():
        # Seen-tokens mask restarts from the wrapper-provided per-split seed
        # (union of all targets preceding this split + the always-candidate 0).
        seen_ref[...] = seed_ref[...]
        mle_acc[...] = jnp.zeros_like(mle_acc)
        cus_acc[...] = jnp.zeros_like(cus_acc)
        r = lax.broadcasted_iota(jnp.int32, (TN, TN), 0)
        c = lax.broadcasted_iota(jnp.int32, (TN, TN), 1)
        tril_ref[...] = jnp.where(r > c, 1.0, 0.0).astype(jnp.bfloat16)

    logits = logits_ref[...].astype(jnp.float32)            # (TN, V)
    tgt = tgt_ref[...]                                       # (TN, 1) int32
    vocab_row = lax.broadcasted_iota(jnp.int32, (1, V), 1)   # (1, V)
    eq = vocab_row == tgt                                    # (TN, V) target one-hot

    # ---- softmax pieces: single exp pass, approx-reciprocal denominator -----
    m = jnp.max(logits, axis=-1, keepdims=True)
    shifted = logits - m
    ex = jnp.exp(shifted)
    sumexp = jnp.sum(ex, axis=-1, keepdims=True)             # (TN, 1)
    probs = ex * pl.reciprocal(sumexp, approx=True)

    # ---- MLE: -log_softmax at the target column, ignore padding / pad rows --
    picked = jnp.sum(jnp.where(eq, shifted, 0.0), axis=-1, keepdims=True)
    lprob_tgt = picked - jnp.log(sumexp)
    row0 = h * rows_per_split + i * TN
    row_ids = row0 + lax.broadcasted_iota(jnp.int32, (TN, 1), 0)
    row_valid = row_ids < n_valid                            # mask pad-extension rows
    mle_rows = jnp.where((tgt != padding_idx) & row_valid, -lprob_tgt, 0.0)

    # ---- prev-context candidate set: exclusive prefix union of one-hots -----
    seen_prev = seen_ref[...]                                # (1, V) 0/1 f32
    onehot32 = jnp.where(eq, 1.0, 0.0)                       # (TN, V) f32
    onehot = onehot32.astype(jnp.bfloat16)
    prefix = jnp.dot(tril_ref[...], onehot,
                     preferred_element_type=jnp.float32)     # exclusive counts
    cand_pre = prefix + seen_prev                            # >0 <=> in S_i (pre-redirect)
    in_s = cand_pre > 0.5
    tgt_in = jnp.sum(jnp.where(eq, cand_pre, 0.0),
                     axis=-1, keepdims=True) > 0.5           # target[i] in S_i ?
    pad_col = vocab_row == padding_idx
    # redirect: candidates equal to target[i] are re-scattered onto padding_idx
    neg = (in_s & jnp.logical_not(eq)) | (pad_col & tgt_in)

    # ---- penalty: sum -log(1-p) over candidates, via per-row log-of-product -
    omp = jnp.maximum(1.0 - probs, 1e-5)
    x = jnp.where(neg, omp, 1.0)
    w = V
    while w % 256 == 0:                      # lane-aligned halving folds
        half = w // 2
        x = x[:, :half] * x[:, half:]
        w = half
    if w % 128 == 0 and w > 128:             # odd multiples of 128: chunk fold
        k = w // 128
        acc = x[:, :128]
        for j in range(1, k):
            acc = acc * x[:, j * 128:(j + 1) * 128]
        x = acc
    cus_rows = -jnp.sum(jnp.log(x), axis=-1, keepdims=True)  # (TN, 1)
    cus_rows = jnp.where(row_valid, cus_rows, 0.0)

    # ---- carry + accumulate ---------------------------------------------------
    union_rows = prefix[TN - 1:TN, :] + onehot32[TN - 1:TN, :]
    seen_ref[...] = jnp.maximum(seen_prev, jnp.minimum(union_rows, 1.0))
    mle_acc[...] = mle_acc[...] + mle_rows
    cus_acc[...] = cus_acc[...] + cus_rows

    @pl.when(i == nsteps - 1)
    def _finalize():
        mle_out_ref[...] = jnp.sum(mle_acc[...], axis=0, keepdims=True)
        cus_out_ref[...] = jnp.sum(cus_acc[...], axis=0, keepdims=True)


def _vmem_capacity_bytes():
    try:
        info = pltpu.get_tpu_info()
        cap = getattr(info, "vmem_capacity_bytes", None)
        if cap:
            return int(cap)
    except Exception:
        pass
    return 64 * 1024 * 1024    # conservative fallback (v7x per-TC physical VMEM)


def candidate_penalty_cross_entropy(logits, target, *, padding_idx, rank_alpha,
                                    candidate_type="prev_context", tn=None,
                                    num_splits=None, vmem_limit_bytes=None):
    if candidate_type != "prev_context":
        raise NotImplementedError("candidate type %s" % candidate_type)
    B, T, V = logits.shape
    N = B * T

    vmem_cap = _vmem_capacity_bytes()
    if vmem_limit_bytes is None:
        vmem_limit_bytes = int(vmem_cap * 0.85)   # headroom for Mosaic internals

    if tn is None:
        # Largest row tile whose double-buffered input blocks plus ~10 live
        # (tn, V) f32-equivalent temporaries fit in about half the VMEM limit.
        in_bytes = jnp.dtype(logits.dtype).itemsize
        per_row = V * (2 * in_bytes + 10 * 4)
        budget = vmem_limit_bytes // 2
        tn = max(8, min(256, (budget // max(per_row, 1)) // 8 * 8))
    else:
        if tn % 8 != 0 or tn < 8:
            raise ValueError("tn must be a positive multiple of 8")
    tn = min(tn, ((N + 7) // 8) * 8)

    n_tiles = -(-N // tn)
    if num_splits is None:
        num_splits = 2 if n_tiles >= 2 else 1     # 2-way split feeds both v7x TCs
    num_splits = max(1, min(num_splits, n_tiles))
    steps = -(-n_tiles // num_splits)
    rows_per_split = steps * tn
    n_pad = num_splits * rows_per_split

    # Keep logits in native dtype (bf16 halves HBM traffic); cast in-kernel.
    lflat = logits.reshape(N, V)
    tflat = target.reshape(N, 1).astype(jnp.int32)
    if n_pad > N:
        lflat = jnp.pad(lflat, ((0, n_pad - N), (0, 0)))
        tflat = jnp.pad(tflat, ((0, n_pad - N), (0, 0)),
                        constant_values=int(padding_idx))

    # Per-split seen-mask seeds: union of all targets strictly before the split
    # plus the always-candidate vocab id 0 (cheap O(N) scatter in XLA).
    t1d = tflat[:, 0]
    seeds = []
    for h_ in range(num_splits):
        boundary = min(h_ * rows_per_split, N)
        s = jnp.zeros((V,), jnp.float32)
        if boundary > 0:
            s = s.at[t1d[:boundary]].set(1.0)
        s = s.at[0].set(1.0)
        seeds.append(s)
    seed = jnp.stack(seeds, axis=0)               # (num_splits, V)

    kernel = functools.partial(_cpce_kernel,
                               padding_idx=int(padding_idx),
                               n_valid=N,
                               rows_per_split=rows_per_split)

    grid_spec = pltpu.PrefetchScalarGridSpec(
        num_scalar_prefetch=0,
        grid=(num_splits, steps),
        in_specs=[
            pl.BlockSpec((1, V), lambda h, i: (h, 0)),               # split seed
            pl.BlockSpec((tn, V), lambda h, i: (h * steps + i, 0)),  # logits tile
            pl.BlockSpec((tn, 1), lambda h, i: (h * steps + i, 0)),  # target column
        ],
        out_specs=(
            pl.BlockSpec((1, 1), lambda h, i: (h, 0)),               # mle partial
            pl.BlockSpec((1, 1), lambda h, i: (h, 0)),               # custom partial
        ),
        scratch_shapes=[
            pltpu.VMEM((1, V), jnp.float32),       # persistent seen-tokens mask
            pltpu.VMEM((tn, 1), jnp.float32),      # per-row mle partials
            pltpu.VMEM((tn, 1), jnp.float32),      # per-row custom partials
            pltpu.VMEM((tn, tn), jnp.bfloat16),    # strict lower-tri mask (once)
        ],
    )

    mle_parts, cus_parts = pl.pallas_call(
        kernel,
        out_shape=(
            jax.ShapeDtypeStruct((num_splits, 1), jnp.float32),
            jax.ShapeDtypeStruct((num_splits, 1), jnp.float32),
        ),
        grid_spec=grid_spec,
        compiler_params=pltpu.CompilerParams(
            dimension_semantics=("parallel", "arbitrary"),
            vmem_limit_bytes=int(vmem_limit_bytes)),
    )(seed, lflat, tflat)

    mle = jnp.sum(mle_parts)
    custom = jnp.sum(cus_parts)
    loss = mle + rank_alpha * custom
    return loss, mle, custom


def reference(logits, target, *, padding_idx, rank_alpha):
    """Pure-JAX mirror of the given PyTorch forward, for verification."""
    V = logits.shape[-1]
    lprobs = jax.nn.log_softmax(logits.astype(jnp.float32), axis=-1).reshape(-1, V)
    tgt = target.reshape(-1)
    N = tgt.shape[0]
    nll = -jnp.take_along_axis(lprobs, tgt[:, None], axis=1)[:, 0]
    nll = jnp.where(tgt == padding_idx, 0.0, nll)
    mle = nll.sum()
    ctx = jnp.broadcast_to(tgt[None, :], (N, N))
    ctx = jnp.tril(ctx, -1)                        # ctx_cands_ term is identically 0
    ctx = jnp.where(ctx == tgt[:, None], padding_idx, ctx)
    neg = (ctx[:, :, None] == jnp.arange(V)[None, None, :]).any(axis=1)
    omp = jnp.maximum(1.0 - jnp.exp(lprobs), 1e-5)
    custom = jnp.where(neg, -jnp.log(omp), 0.0).sum()
    return mle + rank_alpha * custom, mle, custom


if __name__ == "__main__":
    # Deterministic "module params" (this criterion has no learnable weights).
    PADDING_IDX = 1
    RANK_ALPHA = 1.0
    CANDIDATE_TYPE = "prev_context"

    B, T, V = 2, 48, 32
    key = jax.random.PRNGKey(0)
    k_logits, k_target = jax.random.split(key)
    logits = jax.random.normal(k_logits, (B, T, V), dtype=jnp.float32)
    target = jax.random.randint(k_target, (B, T), 0, V, dtype=jnp.int32)
    # Ensure padded and zero targets are exercised.
    target = target.at[0, 3].set(PADDING_IDX).at[1, 2].set(0)

    ref_loss, ref_mle, ref_custom = reference(
        logits, target, padding_idx=PADDING_IDX, rank_alpha=RANK_ALPHA)

    # (a) auto tile (single step), (b) tn=8 -> 12 tiles, 2 splits, cross-tile
    # carry + split seeding, (c) tn=40 -> non-divisible N, pad-to-tile masking.
    for tn in (None, 8, 40):
        loss, mle, custom = candidate_penalty_cross_entropy(
            logits, target,
            padding_idx=PADDING_IDX, rank_alpha=RANK_ALPHA,
            candidate_type=CANDIDATE_TYPE, tn=tn)
        jax.block_until_ready((loss, mle, custom))
        assert jnp.allclose(mle, ref_mle, rtol=1e-4, atol=1e-3), (tn, mle, ref_mle)
        assert jnp.allclose(custom, ref_custom, rtol=1e-2, atol=1e-2), (
            tn, custom, ref_custom)
        assert jnp.allclose(loss, ref_loss, rtol=1e-2, atol=1e-2), (
            tn, loss, ref_loss)

    print("KERNEL_OK")
</pallas_src>

<mosaic_0001>
module attributes {stable_mosaic.version = 11 : i64} {
  func.func @_cpce_kernel(%arg0: i32, %arg1: i32, %arg2: memref<1x32xf32, #tpu.memory_space<vmem>>, %arg3: memref<96x32xf32, #tpu.memory_space<vmem>>, %arg4: memref<96x1xi32, #tpu.memory_space<vmem>>, %arg5: memref<1x1xf32, #tpu.memory_space<vmem>>, %arg6: memref<1x1xf32, #tpu.memory_space<vmem>>, %arg7: memref<1x32xf32, #tpu.memory_space<vmem>>, %arg8: memref<96x1xf32, #tpu.memory_space<vmem>>, %arg9: memref<96x1xf32, #tpu.memory_space<vmem>>, %arg10: memref<96x96xbf16, #tpu.memory_space<vmem>>) attributes {dimension_semantics = [#tpu.dimension_semantics<parallel>, #tpu.dimension_semantics<arbitrary>], iteration_bounds = array<i64: 1, 1>, scalar_prefetch = 0 : i64, scratch_operands = 4 : i64, tpu.core_type = #tpu.core_type<tc>, window_params = [{transform_indices = @transform_0, window_bounds = array<i64: 1, 32>}, {transform_indices = @transform_1, window_bounds = array<i64: 96, 32>}, {transform_indices = @transform_2, window_bounds = array<i64: 96, 1>}, {transform_indices = @transform_3, window_bounds = array<i64: 1, 1>}, {transform_indices = @transform_4, window_bounds = array<i64: 1, 1>}]} {
    %c0_i32 = arith.constant 0 : i32
    %0 = arith.cmpi eq, %arg1, %c0_i32 : i32
    %1 = arith.extui %0 : i1 to i32
    %c0_i32_0 = arith.constant 0 : i32
    %2 = arith.cmpi ne, %1, %c0_i32_0 : i32
    scf.if %2 {
      %c0_43 = arith.constant 0 : index
      %c0_44 = arith.constant 0 : index
      %94 = vector.load %arg2[%c0_43, %c0_44] : memref<1x32xf32, #tpu.memory_space<vmem>>, vector<1x32xf32>
      %c0_45 = arith.constant 0 : index
      %c0_46 = arith.constant 0 : index
      %95 = vector.load %arg7[%c0_45, %c0_46] : memref<1x32xf32, #tpu.memory_space<vmem>>, vector<1x32xf32>
      tpu.vector_store %arg7[%c0_45, %c0_46], %94 {strides = array<i32>} : memref<1x32xf32, #tpu.memory_space<vmem>>, vector<1x32xf32>,
      %cst_47 = arith.constant 0.000000e+00 : f32
      %96 = vector.broadcast %cst_47 : f32 to vector<96x1xf32>
      %c0_48 = arith.constant 0 : index
      %c0_49 = arith.constant 0 : index
      %97 = vector.load %arg8[%c0_48, %c0_49] : memref<96x1xf32, #tpu.memory_space<vmem>>, vector<96x1xf32>
      tpu.vector_store %arg8[%c0_48, %c0_49], %96 {strides = array<i32>} : memref<96x1xf32, #tpu.memory_space<vmem>>, vector<96x1xf32>,
      %cst_50 = arith.constant 0.000000e+00 : f32
      %98 = vector.broadcast %cst_50 : f32 to vector<96x1xf32>
      %c0_51 = arith.constant 0 : index
      %c0_52 = arith.constant 0 : index
      %99 = vector.load %arg9[%c0_51, %c0_52] : memref<96x1xf32, #tpu.memory_space<vmem>>, vector<96x1xf32>
      tpu.vector_store %arg9[%c0_51, %c0_52], %98 {strides = array<i32>} : memref<96x1xf32, #tpu.memory_space<vmem>>, vector<96x1xf32>,
      %100 = tpu.iota {dimensions = array<i32: 0>} : vector<96x96xi32>
      %101 = tpu.iota {dimensions = array<i32: 1>} : vector<96x96xi32>
      %102 = arith.cmpi sgt, %100, %101 : vector<96x96xi32>
      %cst_53 = arith.constant 1.000000e+00 : f32
      %cst_54 = arith.constant 0.000000e+00 : f32
      %103 = vector.broadcast %cst_53 : f32 to vector<96x96xf32>
      %104 = vector.broadcast %cst_54 : f32 to vector<96x96xf32>
      %105 = arith.select %102, %103, %104 : vector<96x96xi1>, vector<96x96xf32>
      %106 = arith.truncf %105 : vector<96x96xf32> to vector<96x96xbf16>
      %c0_55 = arith.constant 0 : index
      %c0_56 = arith.constant 0 : index
      %107 = vector.load %arg10[%c0_55, %c0_56] : memref<96x96xbf16, #tpu.memory_space<vmem>>, vector<96x96xbf16>
      tpu.vector_store %arg10[%c0_55, %c0_56], %106 {strides = array<i32>} : memref<96x96xbf16, #tpu.memory_space<vmem>>, vector<96x96xbf16>,
    } else {
    }
    %c0 = arith.constant 0 : index
    %c0_1 = arith.constant 0 : index
    %3 = vector.load %arg3[%c0, %c0_1] : memref<96x32xf32, #tpu.memory_space<vmem>>, vector<96x32xf32>
    %c0_2 = arith.constant 0 : index
    %c0_3 = arith.constant 0 : index
    %4 = vector.load %arg4[%c0_2, %c0_3] : memref<96x1xi32, #tpu.memory_space<vmem>>, vector<96x1xi32>
    %5 = tpu.iota {dimensions = array<i32: 1>} : vector<1x32xi32>
    %6 = vector.broadcast %5 : vector<1x32xi32> to vector<96x32xi32>
    %7 = vector.broadcast %4 : vector<96x1xi32> to vector<96x32xi32>
    %8 = arith.cmpi eq, %6, %7 : vector<96x32xi32>
    %cst = arith.constant dense<0xFF800000> : vector<96xf32>
    %9 = vector.multi_reduction <maximumf>, %3, %cst [1] : vector<96x32xf32> to vector<96xf32>
    %10 = vector.shape_cast %9 : vector<96xf32> to vector<96x1xf32>
    %11 = vector.broadcast %10 : vector<96x1xf32> to vector<96x32xf32>
    %12 = arith.subf %3, %11 : vector<96x32xf32>
    %13 = math.exp %12 : vector<96x32xf32>
    %cst_4 = arith.constant dense<0.000000e+00> : vector<96xf32>
    %14 = vector.multi_reduction <add>, %13, %cst_4 [1] : vector<96x32xf32> to vector<96xf32>
    %15 = vector.shape_cast %14 : vector<96xf32> to vector<96x1xf32>
    %16 = tpu.reciprocal %15 {approx = true} : vector<96x1xf32> -> vector<96x1xf32>
    %17 = vector.broadcast %16 : vector<96x1xf32> to vector<96x32xf32>
    %18 = arith.mulf %13, %17 : vector<96x32xf32>
    %cst_5 = arith.constant 0.000000e+00 : f32
    %19 = vector.broadcast %cst_5 : f32 to vector<96x32xf32>
    %20 = arith.select %8, %12, %19 : vector<96x32xi1>, vector<96x32xf32>
    %cst_6 = arith.constant dense<0.000000e+00> : vector<96xf32>
    %21 = vector.multi_reduction <add>, %20, %cst_6 [1] : vector<96x32xf32> to vector<96xf32>
    %22 = vector.shape_cast %21 : vector<96xf32> to vector<96x1xf32>
    %23 = math.log %15 : vector<96x1xf32>
    %24 = arith.subf %22, %23 : vector<96x1xf32>
    %c96_i32 = arith.constant 96 : i32
    %25 = arith.muli %arg0, %c96_i32 : i32
    %c96_i32_7 = arith.constant 96 : i32
    %26 = arith.muli %arg1, %c96_i32_7 : i32
    %27 = arith.addi %25, %26 : i32
    %28 = tpu.iota {dimensions = array<i32: 0>} : vector<96x1xi32>
    %29 = vector.broadcast %27 : i32 to vector<96x1xi32>
    %30 = arith.addi %29, %28 : vector<96x1xi32>
    %c96_i32_8 = arith.constant 96 : i32
    %31 = vector.broadcast %c96_i32_8 : i32 to vector<96x1xi32>
    %32 = arith.cmpi slt, %30, %31 : vector<96x1xi32>
    %c1_i32 = arith.constant 1 : i32
    %33 = vector.broadcast %c1_i32 : i32 to vector<96x1xi32>
    %34 = arith.cmpi ne, %4, %33 : vector<96x1xi32>
    %35 = arith.andi %34, %32 : vector<96x1xi1>
    %cst_9 = arith.constant 0.000000e+00 : f32
    %36 = vector.broadcast %cst_9 : f32 to vector<96x1xf32>
    %37 = arith.subf %36, %24 : vector<96x1xf32>
    %cst_10 = arith.constant 0.000000e+00 : f32
    %38 = vector.broadcast %cst_10 : f32 to vector<96x1xf32>
    %39 = arith.select %35, %37, %38 : vector<96x1xi1>, vector<96x1xf32>
    %c0_11 = arith.constant 0 : index
    %c0_12 = arith.constant 0 : index
    %40 = vector.load %arg7[%c0_11, %c0_12] : memref<1x32xf32, #tpu.memory_space<vmem>>, vector<1x32xf32>
    %cst_13 = arith.constant 1.000000e+00 : f32
    %cst_14 = arith.constant 0.000000e+00 : f32
    %41 = vector.broadcast %cst_13 : f32 to vector<96x32xf32>
    %42 = vector.broadcast %cst_14 : f32 to vector<96x32xf32>
    %43 = arith.select %8, %41, %42 : vector<96x32xi1>, vector<96x32xf32>
    %44 = arith.truncf %43 : vector<96x32xf32> to vector<96x32xbf16>
    %c0_15 = arith.constant 0 : index
    %c0_16 = arith.constant 0 : index
    %45 = vector.load %arg10[%c0_15, %c0_16] : memref<96x96xbf16, #tpu.memory_space<vmem>>, vector<96x96xbf16>
    %cst_17 = arith.constant dense<0.000000e+00> : vector<96x32xf32>
    %46 = tpu.matmul %45, %44, %cst_17 {dimension_numbers = #tpu.dot_dimension_numbers<[1], [0], [0], [1], [0, 0, 1, 1], [], []>} : vector<96x96xbf16>, vector<96x32xbf16>, vector<96x32xf32> -> vector<96x32xf32>
    %47 = vector.broadcast %40 : vector<1x32xf32> to vector<96x32xf32>
    %48 = arith.addf %46, %47 : vector<96x32xf32>
    %cst_18 = arith.constant 5.000000e-01 : f32
    %49 = vector.broadcast %cst_18 : f32 to vector<96x32xf32>
    %50 = arith.cmpf ogt, %48, %49 : vector<96x32xf32>
    %cst_19 = arith.constant 0.000000e+00 : f32
    %51 = vector.broadcast %cst_19 : f32 to vector<96x32xf32>
    %52 = arith.select %8, %48, %51 : vector<96x32xi1>, vector<96x32xf32>
    %cst_20 = arith.constant dense<0.000000e+00> : vector<96xf32>
    %53 = vector.multi_reduction <add>, %52, %cst_20 [1] : vector<96x32xf32> to vector<96xf32>
    %54 = vector.shape_cast %53 : vector<96xf32> to vector<96x1xf32>
    %cst_21 = arith.constant 5.000000e-01 : f32
    %55 = vector.broadcast %cst_21 : f32 to vector<96x1xf32>
    %56 = arith.cmpf ogt, %54, %55 : vector<96x1xf32>
    %c1_i32_22 = arith.constant 1 : i32
    %57 = vector.broadcast %c1_i32_22 : i32 to vector<1x32xi32>
    %58 = arith.cmpi eq, %5, %57 : vector<1x32xi32>
    %cst_23 = arith.constant dense<true> : vector<96x32xi1>
    %59 = arith.xori %8, %cst_23 : vector<96x32xi1>
    %60 = arith.andi %50, %59 : vector<96x32xi1>
    %61 = vector.broadcast %58 : vector<1x32xi1> to vector<96x32xi1>
    %62 = vector.broadcast %56 : vector<96x1xi1> to vector<96x32xi1>
    %63 = arith.andi %61, %62 : vector<96x32xi1>
    %64 = arith.ori %60, %63 : vector<96x32xi1>
    %cst_24 = arith.constant 1.000000e+00 : f32
    %65 = vector.broadcast %cst_24 : f32 to vector<96x32xf32>
    %66 = arith.subf %65, %18 : vector<96x32xf32>
    %cst_25 = arith.constant 9.99999974E-6 : f32
    %67 = vector.broadcast %cst_25 : f32 to vector<96x32xf32>
    %68 = arith.maximumf %66, %67 : vector<96x32xf32>
    %cst_26 = arith.constant 1.000000e+00 : f32
    %69 = vector.broadcast %cst_26 : f32 to vector<96x32xf32>
    %70 = arith.select %64, %68, %69 : vector<96x32xi1>, vector<96x32xf32>
    %71 = math.log %70 : vector<96x32xf32>
    %cst_27 = arith.constant dense<0.000000e+00> : vector<96xf32>
    %72 = vector.multi_reduction <add>, %71, %cst_27 [1] : vector<96x32xf32> to vector<96xf32>
    %73 = vector.shape_cast %72 : vector<96xf32> to vector<96x1xf32>
    %cst_28 = arith.constant 0.000000e+00 : f32
    %74 = vector.broadcast %cst_28 : f32 to vector<96x1xf32>
    %75 = arith.subf %74, %73 : vector<96x1xf32>
    %cst_29 = arith.constant 0.000000e+00 : f32
    %76 = vector.broadcast %cst_29 : f32 to vector<96x1xf32>
    %77 = arith.select %32, %75, %76 : vector<96x1xi1>, vector<96x1xf32>
    %78 = vector.extract_strided_slice %46 {offsets = [95, 0], sizes = [1, 32], strides = [1, 1]} : vector<96x32xf32> to vector<1x32xf32>
    %79 = vector.extract_strided_slice %43 {offsets = [95, 0], sizes = [1, 32], strides = [1, 1]} : vector<96x32xf32> to vector<1x32xf32>
    %80 = arith.addf %78, %79 : vector<1x32xf32>
    %cst_30 = arith.constant 1.000000e+00 : f32
    %81 = vector.broadcast %cst_30 : f32 to vector<1x32xf32>
    %82 = arith.minimumf %80, %81 : vector<1x32xf32>
    %83 = arith.maximumf %40, %82 : vector<1x32xf32>
    %c0_31 = arith.constant 0 : index
    %c0_32 = arith.constant 0 : index
    %84 = vector.load %arg7[%c0_31, %c0_32] : memref<1x32xf32, #tpu.memory_space<vmem>>, vector<1x32xf32>
    tpu.vector_store %arg7[%c0_31, %c0_32], %83 {strides = array<i32>} : memref<1x32xf32, #tpu.memory_space<vmem>>, vector<1x32xf32>,
    %c0_33 = arith.constant 0 : index
    %c0_34 = arith.constant 0 : index
    %85 = vector.load %arg8[%c0_33, %c0_34] : memref<96x1xf32, #tpu.memory_space<vmem>>, vector<96x1xf32>
    %86 = arith.addf %85, %39 : vector<96x1xf32>
    %c0_35 = arith.constant 0 : index
    %c0_36 = arith.constant 0 : index
    %87 = vector.load %arg8[%c0_35, %c0_36] : memref<96x1xf32, #tpu.memory_space<vmem>>, vector<96x1xf32>
    tpu.vector_store %arg8[%c0_35, %c0_36], %86 {strides = array<i32>} : memref<96x1xf32, #tpu.memory_space<vmem>>, vector<96x1xf32>,
    %c0_37 = arith.constant 0 : index
    %c0_38 = arith.constant 0 : index
    %88 = vector.load %arg9[%c0_37, %c0_38] : memref<96x1xf32, #tpu.memory_space<vmem>>, vector<96x1xf32>
    %89 = arith.addf %88, %77 : vector<96x1xf32>
    %c0_39 = arith.constant 0 : index
    %c0_40 = arith.constant 0 : index
    %90 = vector.load %arg9[%c0_39, %c0_40] : memref<96x1xf32, #tpu.memory_space<vmem>>, vector<96x1xf32>
    tpu.vector_store %arg9[%c0_39, %c0_40], %89 {strides = array<i32>} : memref<96x1xf32, #tpu.memory_space<vmem>>, vector<96x1xf32>,
    %c0_i32_41 = arith.constant 0 : i32
    %91 = arith.cmpi eq, %arg1, %c0_i32_41 : i32
    %92 = arith.extui %91 : i1 to i32
    %c0_i32_42 = arith.constant 0 : i32
    %93 = arith.cmpi ne, %92, %c0_i32_42 : i32
    scf.if %93 {
      %c0_43 = arith.constant 0 : index
      %c0_44 = arith.constant 0 : index
      %94 = vector.load %arg8[%c0_43, %c0_44] : memref<96x1xf32, #tpu.memory_space<vmem>>, vector<96x1xf32>
      %cst_45 = arith.constant dense<0.000000e+00> : vector<1xf32>
      %95 = vector.multi_reduction <add>, %94, %cst_45 [0] : vector<96x1xf32> to vector<1xf32>
      %96 = vector.shape_cast %95 : vector<1xf32> to vector<1x1xf32>
      %c0_46 = arith.constant 0 : index
      %c0_47 = arith.constant 0 : index
      %97 = vector.load %arg5[%c0_46, %c0_47] : memref<1x1xf32, #tpu.memory_space<vmem>>, vector<1x1xf32>
      tpu.vector_store %arg5[%c0_46, %c0_47], %96 {strides = array<i32>} : memref<1x1xf32, #tpu.memory_space<vmem>>, vector<1x1xf32>,
      %c0_48 = arith.constant 0 : index
      %c0_49 = arith.constant 0 : index
      %98 = vector.load %arg9[%c0_48, %c0_49] : memref<96x1xf32, #tpu.memory_space<vmem>>, vector<96x1xf32>
      %cst_50 = arith.constant dense<0.000000e+00> : vector<1xf32>
      %99 = vector.multi_reduction <add>, %98, %cst_50 [0] : vector<96x1xf32> to vector<1xf32>
      %100 = vector.shape_cast %99 : vector<1xf32> to vector<1x1xf32>
      %c0_51 = arith.constant 0 : index
      %c0_52 = arith.constant 0 : index
      %101 = vector.load %arg6[%c0_51, %c0_52] : memref<1x1xf32, #tpu.memory_space<vmem>>, vector<1x1xf32>
      tpu.vector_store %arg6[%c0_51, %c0_52], %100 {strides = array<i32>} : memref<1x1xf32, #tpu.memory_space<vmem>>, vector<1x1xf32>,
    } else {
    }
    return
  }
  func.func @transform_0(%arg0: i32, %arg1: i32) -> (i32, i32) {
    %c0_i32 = arith.constant 0 : i32
    %c0_i32_0 = arith.constant 0 : i32
    return %arg0, %c0_i32 : i32, i32
  }
  func.func @transform_1(%arg0: i32, %arg1: i32) -> (i32, i32) {
    %c1_i32 = arith.constant 1 : i32
    %0 = arith.muli %arg0, %c1_i32 : i32
    %1 = arith.addi %0, %arg1 : i32
    %c0_i32 = arith.constant 0 : i32
    %c0_i32_0 = arith.constant 0 : i32
    return %1, %c0_i32 : i32, i32
  }
  func.func @transform_2(%arg0: i32, %arg1: i32) -> (i32, i32) {
    %c1_i32 = arith.constant 1 : i32
    %0 = arith.muli %arg0, %c1_i32 : i32
    %1 = arith.addi %0, %arg1 : i32
    %c0_i32 = arith.constant 0 : i32
    %c0_i32_0 = arith.constant 0 : i32
    return %1, %c0_i32 : i32, i32
  }
  func.func @transform_3(%arg0: i32, %arg1: i32) -> (i32, i32) {
    %c0_i32 = arith.constant 0 : i32
    %c0_i32_0 = arith.constant 0 : i32
    return %arg0, %c0_i32 : i32, i32
  }
  func.func @transform_4(%arg0: i32, %arg1: i32) -> (i32, i32) {
    %c0_i32 = arith.constant 0 : i32
    %c0_i32_0 = arith.constant 0 : i32
    return %arg0, %c0_i32 : i32, i32
  }
}

</mosaic_0001>

<bundles_post_ra>
// kernel: tpu_custom_call.1
= control target key start
LH: loop header
LB: loop body
LE: loop exit
PB: predicated region body
PF: predicated region fallthrough
CT: control target
= control target key end

     0   :  { %10 = vsyncpa [#allocation7], 0  ;;  %v1508_v2 = vmov 0   ;;  %v95_v7 = vlaneseq  ;;  %s2590_s0 = inlined_call_operand.vmem [shape: f32[1,32], index: 0, kind: input, shape index: {}]   ;;  %s2591_s1 = inlined_call_operand.vmem [shape: f32[96,32], index: 1, kind: input, shape index: {}]   ;;  %s2592_s2 = inlined_call_operand.vmem [shape: s32[96,1], index: 2, kind: input, shape index: {}]   ;;  %s2593_s3 = inlined_call_operand.hbm [shape: f32[1,1], index: 3, kind: output, shape index: {0}]   ;;  %s2594_s4 = inlined_call_operand.hbm [shape: f32[1,1], index: 4, kind: output, shape index: {1}]  }
   0x1   :  { %v217_v0 = vld [vmem:[%s2592_s2 + $0x50] sm:$0xff]  ;;  %v215_v1 = vld [vmem:[%s2592_s2 + $0x40] sm:$0xff]  ;;  %1350 = vset.pattern.permute.xlu1 %v1508_v2  ;;  %1349 = vset.pattern.permute.xlu0 %v1508_v2  ;;  %v218_v3 = vld [vmem:[%s2592_s2 + $0x58] sm:$0xff] }
   0x2   :  { %252 = vperm.xlu0 %1349, %v217_v0   ;;  %246 = vperm.xlu1 %1350, %v215_v1   ;;  %v216_v4 = vld [vmem:[%s2592_s2 + $0x48] sm:$0xff]  ;;  %v214_v5 = vld [vmem:[%s2592_s2 + $0x38] sm:$0xff]  ;;  %v213_v6 = vld [vmem:[%s2592_s2 + $0x30] sm:$0xff] }
   0x6   :  { %255 = vperm.xlu0 %1349, %v218_v3   ;;  %249 = vperm.xlu1 %1350, %v216_v4  }
   0x7   :  { %11 = vsyncpa [#allocation9], 0  ;;  %v212_v8 = vld [vmem:[%s2592_s2 + $0x28] sm:$0xff]  ;;  %v211_v9 = vld [vmem:[%s2592_s2 + $0x20] sm:$0xff]  ;;  %v1564_v10 = vshrl.u32 %v95_v7, 7  ;;  %v1566_v11 = vand.u32 127, %v95_v7 }
   0x8   :  { %v210_v19 = vld [vmem:[%s2592_s2 + $0x18] sm:$0xff]  ;;  %v209_v20 = vld [vmem:[%s2592_s2 + $0x10] sm:$0xff]  ;;  %v2596_v21 = vmov 0.0   ;;  %vm182_vm4 = vcmask 781312   ;;  %v208_v30 = vld [vmem:[%s2592_s2 + $0x8] sm:$0xff]  ;;  %vm636_vm13 = vcmask 785408  }
   0x9   :  { %v97_v12 = vadd.s32 8, %v1564_v10  ;;  %v100_v13 = vadd.s32 32, %v1564_v10  ;;  %v101_v14 = vadd.s32 40, %v1564_v10  ;;  %v98_v15 = vadd.s32 16, %v1564_v10  ;;  %v1599_v31 = vld [vmem:[%s2592_s2] sm:$0xff]  ;;  %v1643_v56 = vld [vmem:[%s2591_s1 + $0x10] sm:$0xff] }
   0xa   :  { %243 = vperm.xlu1 %1350, %v214_v5   ;;  %240 = vperm.xlu0 %1349, %v213_v6   ;;  %v99_v16 = vadd.s32 24, %v1564_v10  ;;  %v102_v17 = vadd.s32 48, %v1564_v10  ;;  %v103_v18 = vadd.s32 56, %v1564_v10  ;;  %vm110_vm0 = vcmp.gt.s32.totalorder %v1564_v10, %v1566_v11  ;;  %v1636_v54 = vld [vmem:[%s2591_s1] sm:$0xff]  ;;  %v1648_v57 = vld [vmem:[%s2591_s1 + $0x8] sm:$0xff]  ;;  %v1657_v60 = vld [vmem:[%s2591_s1 + $0x18] sm:$0xff] }
   0xb   :  { %vm111_vm1 = vcmp.gt.s32.totalorder %v97_v12, %v1566_v11  ;;  %vm114_vm2 = vcmp.gt.s32.totalorder %v100_v13, %v1566_v11  ;;  %vm115_vm3 = vcmp.gt.s32.totalorder %v101_v14, %v1566_v11  ;;  %v122_v22 = vsel %vm110_vm0, 1.0, %v2596_v21  ;;  %v1662_v61 = vld [vmem:[%s2591_s1 + $0x20] sm:$0xff]  ;;  %v1671_v0 = vld [vmem:[%s2591_s1 + $0x28] sm:$0xff]  ;;  %v1676_v1 = vld [vmem:[%s2591_s1 + $0x30] sm:$0xff] }
   0xc   :  { %v123_v23 = vsel %vm111_vm1, 1.0, %v2596_v21  ;;  %v126_v24 = vsel %vm114_vm2, 1.0, %v2596_v21  ;;  %v127_v25 = vsel %vm115_vm3, 1.0, %v2596_v21  ;;  %v1282_v26 = vpack.c.bf16 %v122_v22, %v122_v22  ;;  %v1685_v4 = vld [vmem:[%s2591_s1 + $0x38] sm:$0xff]  ;;  %v1690_v5 = vld [vmem:[%s2591_s1 + $0x40] sm:$0xff] }
   0xd   :  { %v1283_v27 = vpack.c.bf16 %v123_v23, %v123_v23  ;;  %v1286_v28 = vpack.c.bf16 %v126_v24, %v126_v24  ;;  %v1287_v29 = vpack.c.bf16 %v127_v25, %v127_v25  ;;  %vm112_vm5 = vcmp.gt.s32.totalorder %v98_v15, %v1566_v11  ;;  %v1713_v14 = vld [vmem:[%s2591_s1 + $0x58] sm:$0xff] }
   0xe   :  { %237 = vperm.xlu1 %1350, %v212_v8   ;;  %234 = vperm.xlu0 %1349, %v211_v9   ;;  %vm113_vm6 = vcmp.gt.s32.totalorder %v99_v16, %v1566_v11  ;;  %vm116_vm7 = vcmp.gt.s32.totalorder %v102_v17, %v1566_v11  ;;  %183 = vst.msk [vmem:[#allocation5] sm:$0xf] %vm182_vm4, %v1282_v26  ;;  %v124_v32 = vsel %vm112_vm5, 1.0, %v2596_v21  ;;  %v104_v40 = vadd.s32 64, %v1564_v10  ;;  %v1699_v8 = vld [vmem:[%s2591_s1 + $0x48] sm:$0xff]  ;;  %v1704_v9 = vld [vmem:[%s2591_s1 + $0x50] sm:$0xff] }
   0xf   :  { %184 = vst.msk [vmem:[#allocation5 + $0x4] sm:$0xf] %vm182_vm4, %v1283_v27  ;;  %187 = vst.msk [vmem:[#allocation5 + $0x10] sm:$0xf] %vm182_vm4, %v1286_v28  ;;  %v125_v33 = vsel %vm113_vm6, 1.0, %v2596_v21  ;;  %vm117_vm8 = vcmp.gt.s32.totalorder %v103_v18, %v1566_v11  ;;  %v128_v34 = vsel %vm116_vm7, 1.0, %v2596_v21  ;;  %v1284_v35 = vpack.c.bf16 %v124_v32, %v124_v32 }
  0x10   :  { %188 = vst.msk [vmem:[#allocation5 + $0x14] sm:$0xf] %vm182_vm4, %v1287_v29  ;;  %v1285_v36 = vpack.c.bf16 %v125_v33, %v125_v33  ;;  %v129_v37 = vsel %vm117_vm8, 1.0, %v2596_v21  ;;  %v1288_v38 = vpack.c.bf16 %v128_v34, %v128_v34  ;;  %v105_v41 = vadd.s32 72, %v1564_v10 }
  0x11   :  { %v1289_v39 = vpack.c.bf16 %v129_v37, %v129_v37  ;;  %185 = vst.msk [vmem:[#allocation5 + $0x8] sm:$0xf] %vm182_vm4, %v1284_v35  ;;  %v106_v42 = vadd.s32 80, %v1564_v10  ;;  %v107_v43 = vadd.s32 88, %v1564_v10  ;;  %vm118_vm9 = vcmp.gt.s32.totalorder %v104_v40, %v1566_v11 }
  0x12   :  { %231 = vperm.xlu1 %1350, %v210_v19   ;;  %228 = vperm.xlu0 %1349, %v209_v20   ;;  %186 = vst.msk [vmem:[#allocation5 + $0xc] sm:$0xf] %vm182_vm4, %v1285_v36  ;;  %189 = vst.msk [vmem:[#allocation5 + $0x18] sm:$0xf] %vm182_vm4, %v1288_v38  ;;  %vm119_vm10 = vcmp.gt.s32.totalorder %v105_v41, %v1566_v11  ;;  %v130_v44 = vsel %vm118_vm9, 1.0, %v2596_v21  ;;  %vm2600_vm14 = vcmask 261120  }
  0x13   :  { %190 = vst.msk [vmem:[#allocation5 + $0x1c] sm:$0xf] %vm182_vm4, %v1289_v39  ;;  %v131_v45 = vsel %vm119_vm10, 1.0, %v2596_v21  ;;  %vm120_vm11 = vcmp.gt.s32.totalorder %v106_v42, %v1566_v11  ;;  %vm121_vm12 = vcmp.gt.s32.totalorder %v107_v43, %v1566_v11  ;;  %v1290_v46 = vpack.c.bf16 %v130_v44, %v130_v44 }
  0x14   :  { %v1291_v47 = vpack.c.bf16 %v131_v45, %v131_v45  ;;  %v132_v48 = vsel %vm120_vm11, 1.0, %v2596_v21  ;;  %v133_v50 = vsel %vm121_vm12, 1.0, %v2596_v21  ;;  %v270_v55 = vsel %vm2600_vm14, %v1636_v54, -inf }
  0x15   :  { %v1292_v51 = vpack.c.bf16 %v132_v48, %v132_v48  ;;  %191 = vst.msk [vmem:[#allocation5 + $0x20] sm:$0xf] %vm182_vm4, %v1290_v46  ;;  %v1293_v53 = vpack.c.bf16 %v133_v50, %v133_v50  ;;  %v276_v58 = vsel %vm2600_vm14, %v1643_v56, -inf  ;;  %v273_v59 = vsel %vm2600_vm14, %v1648_v57, -inf }
  0x16   :  { %225 = vperm.xlu1 %1350, %v208_v30   ;;  %222 = vperm.xlu0 %1349, %v1599_v31   ;;  %v1351_v49 = vld [vmem:[#allocation5] sm:$0xff]   ;;  %192 = vst.msk [vmem:[#allocation5 + $0x24] sm:$0xf] %vm182_vm4, %v1291_v47  ;;  %v279_v62 = vsel %vm2600_vm14, %v1657_v60, -inf  ;;  %v282_v63 = vsel %vm2600_vm14, %v1662_v61, -inf  ;;  %v285_v2 = vsel %vm2600_vm14, %v1671_v0, -inf }
  0x17   :  { %v1352_v52 = vld [vmem:[#allocation5 + $0x10] sm:$0xff]   ;;  %1318 = vmatprep.mubr.msk.bf16.mxu0 %vm636_vm13, %v1351_v49  ;;  %193 = vst.msk [vmem:[#allocation5 + $0x28] sm:$0xf] %vm182_vm4, %v1292_v51  ;;  %194 = vst.msk [vmem:[#allocation5 + $0x2c] sm:$0xf] %vm182_vm4, %v1293_v53  ;;  %v288_v3 = vsel %vm2600_vm14, %v1676_v1, -inf }
  0x18   :  { %1322 = vmatprep.mubr.msk.bf16.mxu1 %vm636_vm13, %v1352_v52  ;;  %v291_v6 = vsel %vm2600_vm14, %v1685_v4, -inf  ;;  %v294_v7 = vsel %vm2600_vm14, %v1690_v5, -inf  ;;  %v297_v12 = vsel %vm2600_vm14, %v1699_v8, -inf  ;;  %v300_v13 = vsel %vm2600_vm14, %v1704_v9, -inf }
  0x19   :  { %v303_v15 = vsel %vm2600_vm14, %v1713_v14, -inf  ;;  %v2611_v20 = vmov 0  ;;  %v1510_v22 = vmov 1.0|1.0   ;;  %v1353_v32 = vld [vmem:[#allocation5 + $0x8] sm:$0xff]  }
  0x1a   :  { %v1354_v33 = vld [vmem:[#allocation5 + $0x18] sm:$0xff]  }
  0x1d   :  { %v1355_v34 = vld [vmem:[#allocation5 + $0x20] sm:$0xff]  }
  0x1e   :  { %v1356_v35 = vld [vmem:[#allocation5 + $0x28] sm:$0xff]  }
  0x35   :  { %271 = vmax.xlane.f32.xlu0 %v270_v55 }
  0x39   :  { %277 = vmax.xlane.f32.xlu0 %v276_v58 }
  0x3a   :  { %274 = vmax.xlane.f32.xlu1 %v273_v59 }
  0x3d   :  { %280 = vmax.xlane.f32.xlu0 %v279_v62 }
  0x3e   :  { %283 = vmax.xlane.f32.xlu1 %v282_v63 }
  0x41   :  { %286 = vmax.xlane.f32.xlu0 %v285_v2 }
  0x42   :  { %289 = vmax.xlane.f32.xlu1 %v288_v3 }
  0x45   :  { %292 = vmax.xlane.f32.xlu0 %v291_v6 }
  0x46   :  { %295 = vmax.xlane.f32.xlu1 %v294_v7 }
  0x49   :  { %298 = vmax.xlane.f32.xlu0 %v297_v12 }
  0x4a   :  { %301 = vmax.xlane.f32.xlu1 %v300_v13 }
  0x4d   :  { %304 = vmax.xlane.f32.xlu0 %v303_v15 }
  0x7d   :  { %v1717_v16 = vpop.permute.xlu0 %252  ;;  %v1719_v17 = vpop.permute.xlu1 %246 }
  0x7e   :  { %vm2599_vm15 = vcmp.eq.s32.totalorder %v1566_v11, %v1717_v16  ;;  %vm2602_vm0 = vcmp.eq.s32.totalorder %v1566_v11, %v1719_v17 }
  0x81   :  { %v256_v18 = vpop.permute.xlu0 %255  ;;  %v1721_v19 = vpop.permute.xlu1 %249 }
  0x82   :  { %vm1728_vm1 = vcmp.eq.s32.totalorder %v1566_v11, %v256_v18  ;;  %vm2601_vm2 = vcmp.eq.s32.totalorder %v1566_v11, %v1721_v19 }
  0x83   :  { %v2612_v20 = vsel %vm1728_vm1, 4294967295, %v2611_v20  ;;  %vm1264_vm3 = vmpackc.low %vm1728_vm1, %vm2599_vm15 }
  0x84   :  { %1306 = vmatprep.subr.msk.bf16.mxu0 %vm1264_vm3, %v1510_v22  ;;  %1330 = vmatprep.subr.msk.bf16.mxu1 %vm1264_vm3, %v1510_v22  ;;  %vm1266_vm4 = vmpackc.low %vm2601_vm2, %vm2602_vm0 }
  0x85   :  { %v1739_v23 = vpop.permute.xlu1 %243  ;;  %v1741_v24 = vpop.permute.xlu0 %240  ;;  %1307 = vmatpush3.bf16.msk.msra.mxu0 %vm1264_vm3, %v1510_v22  ;;  %1336 = vmatpush3.bf16.msk.msra.mxu1 %vm1264_vm3, %v1510_v22 }
  0x86   :  { %vm2605_vm5 = vcmp.eq.s32.totalorder %v1566_v11, %v1739_v23  ;;  %vm263_vm6 = vcmp.eq.s32.totalorder %v1566_v11, %v1741_v24  ;;  %1308 = vmatprep.subr.msk.bf16.mxu0 %vm1266_vm4, %v1510_v22  ;;  %1331 = vmatprep.subr.msk.bf16.mxu1 %vm1266_vm4, %v1510_v22 }
  0x87   :  { %vm1268_vm7 = vmpackc.low %vm2605_vm5, %vm263_vm6 }
  0x89   :  { %v1753_v25 = vpop.permute.xlu1 %237  ;;  %v1755_v26 = vpop.permute.xlu0 %234  ;;  %1309 = vmatpush3.bf16.msk.msra.mxu0 %vm1266_vm4, %v1510_v22  ;;  %1337 = vmatpush3.bf16.msk.msra.mxu1 %vm1266_vm4, %v1510_v22 }
  0x8a   :  { %vm2603_vm8 = vcmp.eq.s32.totalorder %v1566_v11, %v1753_v25  ;;  %vm261_vm9 = vcmp.eq.s32.totalorder %v1566_v11, %v1755_v26  ;;  %1310 = vmatprep.subr.msk.bf16.mxu0 %vm1268_vm7, %v1510_v22  ;;  %1332 = vmatprep.subr.msk.bf16.mxu1 %vm1268_vm7, %v1510_v22 }
  0x8b   :  { %vm1270_vm10 = vmpackc.low %vm2603_vm8, %vm261_vm9 }
  0x8d   :  { %v1767_v27 = vpop.permute.xlu1 %231  ;;  %v1769_v28 = vpop.permute.xlu0 %228  ;;  %1311 = vmatpush3.bf16.msk.msra.mxu0 %vm1268_vm7, %v1510_v22  ;;  %1338 = vmatpush3.bf16.msk.msra.mxu1 %vm1268_vm7, %v1510_v22 }
  0x8e   :  { %vm260_vm11 = vcmp.eq.s32.totalorder %v1566_v11, %v1767_v27  ;;  %vm259_vm12 = vcmp.eq.s32.totalorder %v1566_v11, %v1769_v28  ;;  %1312 = vmatprep.subr.msk.bf16.mxu0 %vm1270_vm10, %v1510_v22  ;;  %1333 = vmatprep.subr.msk.bf16.mxu1 %vm1270_vm10, %v1510_v22 }
  0x8f   :  { %vm1272_vm3 = vmpackc.low %vm260_vm11, %vm259_vm12 }
  0x91   :  { %v1781_v29 = vpop.permute.xlu1 %225  ;;  %v1783_v30 = vpop.permute.xlu0 %222  ;;  %1313 = vmatpush3.bf16.msk.msra.mxu0 %vm1270_vm10, %v1510_v22  ;;  %1339 = vmatpush3.bf16.msk.msra.mxu1 %vm1270_vm10, %v1510_v22 }
  0x92   :  { %vm2604_vm4 = vcmp.eq.s32.totalorder %v1566_v11, %v1781_v29  ;;  %vm257_vm7 = vcmp.eq.s32.totalorder %v1566_v11, %v1783_v30  ;;  %1314 = vmatprep.subr.msk.bf16.mxu0 %vm1272_vm3, %v1510_v22  ;;  %1334 = vmatprep.subr.msk.bf16.mxu1 %vm1272_vm3, %v1510_v22 }
  0x93   :  { %vm1274_vm10 = vmpackc.low %vm2604_vm4, %vm257_vm7 }
  0x95   :  { %1315 = vmatpush3.bf16.msk.msra.mxu0 %vm1272_vm3, %v1510_v22  ;;  %1340 = vmatpush3.bf16.msk.msra.mxu1 %vm1272_vm3, %v1510_v22  ;;  %vm2598_vm3 = vcmask 7168  }
  0x96   :  { %1316 = vmatprep.subr.msk.bf16.mxu0 %vm1274_vm10, %v1510_v22  ;;  %1335 = vmatprep.subr.msk.bf16.mxu1 %vm1274_vm10, %v1510_v22 }
  0x99   :  { %1317 = vmatpush3.bf16.msk.msra.mxu0 %vm1274_vm10, %v1510_v22  ;;  %1341 = vmatpush3.bf16.msk.msra.mxu1 %vm1274_vm10, %v1510_v22 }
  0x9c   :  { %1319 = vmatmul.mubr.msk.bf16.vlgmr.msra.gmra.mxu0 %vm636_vm13, %v1353_v32  ;;  %1323 = vmatmul.mubr.msk.bf16.vlgmr.msra.gmra.mxu1 %vm636_vm13, %v1354_v33 }
  0x9d   :  { %1326 = vmatprep.mubr.msk.bf16.mxu1 %vm636_vm13, %v1355_v34 }
  0xa4   :  { %1327 = vmatmul.mubr.msk.bf16.gmra.mxu1 %vm636_vm13, %v1356_v35  ;;  %vm68_vm13 = vcmask 253952  }
  0xbe   :  { %v272_v36 = vpop.xlane.xlu0 %271 }
  0xbf   :  { %v1806_v37 = vsub.f32 %v1636_v54, %v272_v36 }
  0xc1   :  { %v318_v38 = vmul.f32 1.442695, %v1806_v37 }
  0xc2   :  { %v278_v39 = vpop.xlane.xlu0 %277 }
  0xc3   :  { %1357 = vpow2.f32 %v318_v38  ;;  %v1810_v40 = vsub.f32 %v1643_v56, %v278_v39  ;;  %v275_v41 = vpop.xlane.xlu1 %274 }
  0xc4   :  { %v1813_v42 = vsub.f32 %v1648_v57, %v275_v41 }
  0xc5   :  { %v322_v43 = vmul.f32 1.442695, %v1810_v40 }
  0xc6   :  { %v320_v44 = vmul.f32 1.442695, %v1813_v42  ;;  %v281_v45 = vpop.xlane.xlu0 %280 }
  0xc7   :  { %1359 = vpow2.f32 %v322_v43  ;;  %v1818_v46 = vsub.f32 %v1657_v60, %v281_v45  ;;  %v284_v47 = vpop.xlane.xlu1 %283 }
  0xc8   :  { %1361 = vpow2.f32 %v320_v44  ;;  %v1821_v48 = vsub.f32 %v1662_v61, %v284_v47 }
  0xc9   :  { %v324_v49 = vmul.f32 1.442695, %v1818_v46 }
  0xca   :  { %v326_v50 = vmul.f32 1.442695, %v1821_v48  ;;  %v287_v51 = vpop.xlane.xlu0 %286 }
  0xcb   :  { %1363 = vpow2.f32 %v324_v49  ;;  %v1826_v52 = vsub.f32 %v1671_v0, %v287_v51  ;;  %v290_v53 = vpop.xlane.xlu1 %289 }
  0xcc   :  { %1365 = vpow2.f32 %v326_v50  ;;  %v1829_v54 = vsub.f32 %v1676_v1, %v290_v53 }
  0xcd   :  { %v328_v55 = vmul.f32 1.442695, %v1826_v52 }
  0xce   :  { %v330_v56 = vmul.f32 1.442695, %v1829_v54  ;;  %v293_v57 = vpop.xlane.xlu0 %292 }
  0xcf   :  { %1367 = vpow2.f32 %v328_v55  ;;  %v1834_v58 = vsub.f32 %v1685_v4, %v293_v57  ;;  %v296_v59 = vpop.xlane.xlu1 %295  ;;  %v67_v4 = vld [vmem:[%s2590_s0] sm:$0x1]  ;;  %v739_v55 = vsub.s32 0, %v1564_v10 }
  0xd0   :  { %v1836_v60 = vpop.eup %1357  ;;  %1369 = vpow2.f32 %v330_v56  ;;  %v1839_v61 = vsub.f32 %v1690_v5, %v296_v59  ;;  %69 = vst.msk [vmem:[#allocation2] sm:$0x1] %vm68_vm13, %v67_v4 }
  0xd1   :  { %v332_v62 = vmul.f32 1.442695, %v1834_v58  ;;  %v342_v63 = vsel %vm2600_vm14, %v1836_v60, 0.0 }
  0xd2   :  { %v334_v0 = vmul.f32 1.442695, %v1839_v61  ;;  %343 = vadd.xlane.f32.xlu1 %v342_v63  ;;  %v299_v1 = vpop.xlane.xlu0 %298 }
  0xd3   :  { %1371 = vpow2.f32 %v332_v62  ;;  %v1846_v2 = vsub.f32 %v1699_v8, %v299_v1  ;;  %v302_v3 = vpop.xlane.xlu1 %301 }
  0xd4   :  { %v1851_v5 = vpop.eup %1359  ;;  %1373 = vpow2.f32 %v334_v0  ;;  %v1854_v6 = vsub.f32 %v1704_v9, %v302_v3 }
  0xd5   :  { %v1857_v7 = vpop.eup %1361  ;;  %v336_v12 = vmul.f32 1.442695, %v1846_v2  ;;  %v348_v8 = vsel %vm2600_vm14, %v1851_v5, 0.0 }
  0xd6   :  { %v338_v13 = vmul.f32 1.442695, %v1854_v6  ;;  %349 = vadd.xlane.f32.xlu1 %v348_v8  ;;  %v345_v15 = vsel %vm2600_vm14, %v1857_v7, 0.0  ;;  %v305_v50 = vpop.xlane.xlu0 %304 }
  0xd7   :  { %1375 = vpow2.f32 %v336_v12  ;;  %346 = vadd.xlane.f32.xlu0 %v345_v15  ;;  %v1898_v51 = vsub.f32 %v1713_v14, %v305_v50  ;;  %v1902_v56 = vld [vmem:[#allocation2] sm:$0x1] }
  0xd8   :  { %v1865_v18 = vpop.eup %1363  ;;  %1377 = vpow2.f32 %v338_v13  ;;  %v740_v57 = vrot.slane %v1902_v56, %v739_v55 }
  0xd9   :  { %v1867_v9 = vpop.eup %1365  ;;  %v351_v22 = vsel %vm2600_vm14, %v1865_v18, 0.0  ;;  %v340_v53 = vmul.f32 1.442695, %v1898_v51 }
  0xda   :  { %v354_v32 = vsel %vm2600_vm14, %v1867_v9, 0.0 }
  0xdb   :  { %355 = vadd.xlane.f32.xlu1 %v354_v32  ;;  %352 = vadd.xlane.f32.xlu0 %v351_v22  ;;  %1379 = vpow2.f32 %v340_v53 }
  0xdc   :  { %v1873_v33 = vpop.eup %1367 }
  0xdd   :  { %v1875_v34 = vpop.eup %1369  ;;  %v357_v35 = vsel %vm2600_vm14, %v1873_v33, 0.0 }
  0xde   :  { %v360_v36 = vsel %vm2600_vm14, %v1875_v34, 0.0 }
  0xdf   :  { %361 = vadd.xlane.f32.xlu1 %v360_v36  ;;  %358 = vadd.xlane.f32.xlu0 %v357_v35 }
  0xe0   :  { %v1881_v38 = vpop.eup %1371 }
  0xe1   :  { %v1883_v39 = vpop.eup %1373  ;;  %v363_v41 = vsel %vm2600_vm14, %v1881_v38, 0.0 }
  0xe2   :  { %v366_v43 = vsel %vm2600_vm14, %v1883_v39, 0.0 }
  0xe3   :  { %367 = vadd.xlane.f32.xlu1 %v366_v43  ;;  %364 = vadd.xlane.f32.xlu0 %v363_v41 }
  0xe4   :  { %v1889_v44 = vpop.eup %1375 }
  0xe5   :  { %v1891_v45 = vpop.eup %1377  ;;  %v369_v47 = vsel %vm2600_vm14, %v1889_v44, 0.0 }
  0xe6   :  { %2613 = vst [vmem:[#allocation12_spill] sm:$0xff] %v1891_v45  ;;  %v372_v49 = vsel %vm2600_vm14, %v1891_v45, 0.0 }
  0xe7   :  { %373 = vadd.xlane.f32.xlu1 %v372_v49  ;;  %370 = vadd.xlane.f32.xlu0 %v369_v47  ;;  %v1511_v47 = vmov 1966171168  }
  0xe8   :  { %v1913_v8 = vpop.eup %1379  ;;  %v1026_v49 = vunpack.c.l.s4 %v1511_v47 }
  0xe9   :  { %v375_v55 = vsel %vm2600_vm14, %v1913_v8, 0.0 }
 0x15c   :  { %v1320_v59 = vpop.f32.mrf.mxu0  ;;  %v1324_v62 = vpop.f32.mrf.mxu1 }
 0x15d   :  { %v1905_v63 = vadd.f32 %v1320_v59, %v740_v57 }
 0x15e   :  { %v689_v0 = vpop.f32.mrf.mxu0  ;;  %v705_v1 = vpop.f32.mrf.mxu1 }
 0x15f   :  { %v1907_v3 = vadd.f32 %v740_v57, %v689_v0  ;;  %v768_v14 = vsel %vm259_vm12, %v1905_v63, 0.0  ;;  %v1925_v43 = vadd.f32 %v740_v57, %v705_v1  ;;  %vm756_vm10 = vcmp.gt.f32.partialorder %v1905_v63, 0.5 }
 0x160   :  { %v1321_v4 = vpop.f32.mrf.mxu0  ;;  %v1325_v12 = vpop.f32.mrf.mxu1  ;;  %v784_v13 = vsel %vm2600_vm14, %v768_v14, 0.0  ;;  %v1940_v14 = vadd.f32 %v1324_v62, %v740_v57 }
 0x161   :  { %v766_v22 = vsel %vm257_vm7, %v1907_v3, 0.0  ;;  %v1920_v32 = vadd.f32 %v1321_v4, %v740_v57  ;;  %785 = vadd.xlane.f32.xlu0 %v784_v13  ;;  %v1027_v13 = vunpack.c.0.s8 %v1026_v49 }
 0x162   :  { %v692_v15 = vpop.f32.mrf.mxu0  ;;  %v708_v36 = vpop.f32.mrf.mxu1  ;;  %v778_v41 = vsel %vm2600_vm14, %v766_v22, 0.0  ;;  %v587_v22 = vsel %vm1728_vm1, 1.0, %v2596_v21 }
 0x163   :  { %v1922_v35 = vadd.f32 %v740_v57, %v692_v15  ;;  %779 = vadd.xlane.f32.xlu1 %v778_v41  ;;  %v1934_v0 = vadd.f32 %v740_v57, %v708_v36  ;;  %v769_v1 = vsel %vm260_vm11, %v1920_v32, 0.0  ;;  %v770_v15 = vsel %vm261_vm9, %v1925_v43, 0.0 }
 0x164   :  { %v1328_v50 = vpop.f32.mrf.mxu1  ;;  %v787_v47 = vsel %vm2600_vm14, %v769_v1, 0.0  ;;  %v790_v62 = vsel %vm2600_vm14, %v770_v15, 0.0  ;;  %v1030_v45 = vsub.s32 %v1027_v13, %v1564_v10 }
 0x165   :  { %v767_v53 = vsel %vm2604_vm4, %v1922_v35, 0.0  ;;  %v771_v49 = vsel %vm2603_vm8, %v1934_v0, 0.0 }
 0x166   :  { %v781_v59 = vsel %vm2600_vm14, %v767_v53, 0.0  ;;  %v721_v4 = vpop.f32.mrf.mxu1  ;;  %v1950_v53 = vadd.f32 %v1325_v12, %v740_v57  ;;  %v772_v12 = vsel %vm263_vm6, %v1940_v14, 0.0  ;;  %v793_v15 = vsel %vm2600_vm14, %v771_v49, 0.0 }
 0x167   :  { %782 = vadd.xlane.f32.xlu0 %v781_v59  ;;  %376 = vadd.xlane.f32.xlu1 %v375_v55  ;;  %v1957_v55 = vadd.f32 %v740_v57, %v721_v4  ;;  %v1972_v4 = vadd.f32 %v1328_v50, %v740_v57 }
 0x168   :  { %v1329_v36 = vpop.f32.mrf.mxu1  ;;  %v773_v10 = vsel %vm2605_vm5, %v1950_v53, 0.0 }
 0x169   :  { %v1021_v41 = vadd.f32 %v1329_v36, %v587_v22  ;;  %v1979_v49 = vadd.f32 %v1329_v36, %v740_v57 }
 0x16a   :  { %v724_v21 = vpop.f32.mrf.mxu1 }
 0x16b   :  { %788 = vadd.xlane.f32.xlu0 %v787_v47  ;;  %v1022_v59 = vmin.f32 %v1021_v41, 1.0  ;;  %791 = vadd.xlane.f32.xlu1 %v790_v62  ;;  %v1965_v22 = vadd.f32 %v740_v57, %v724_v21  ;;  %v796_v47 = vsel %vm2600_vm14, %v772_v12, 0.0  ;;  %v774_v41 = vsel %vm2602_vm0, %v1957_v55, 0.0 }
 0x16c   :  { %v799_v21 = vsel %vm2600_vm14, %v773_v10, 0.0  ;;  %v777_v36 = vsel %vm1728_vm1, %v1979_v49, 0.0 }
 0x16d   :  { %v1024_v1 = vcombine.high %v1022_v59, %v1022_v59  ;;  %v802_v59 = vsel %vm2600_vm14, %v774_v41, 0.0  ;;  %v775_v50 = vsel %vm2601_vm2, %v1965_v22, 0.0 }
 0x16f   :  { %794 = vadd.xlane.f32.xlu0 %v793_v15  ;;  %v1031_v13 = vrot.slane %v1024_v1, %v1030_v45  ;;  %797 = vadd.xlane.f32.xlu1 %v796_v47  ;;  %v776_v1 = vsel %vm2599_vm15, %v1972_v4, 0.0  ;;  %v805_v47 = vsel %vm2600_vm14, %v775_v50, 0.0 }
 0x170   :  { %v808_v57 = vsel %vm2600_vm14, %v776_v1, 0.0  ;;  %v2614_v1 = vmov 0.0  }
 0x171   :  { %v1032_v62 = vcombine.high %v1031_v13, %v1031_v13  ;;  %v811_v13 = vsel %vm2600_vm14, %v777_v36, 0.0  ;;  %71 = vst.msk [vmem:[#allocation3] sm:$0xff] %vm2598_vm3, %v2614_v1  ;;  %72 = vst.msk [vmem:[#allocation3 + $0x8] sm:$0xff] %vm2598_vm3, %v2614_v1  ;;  %v2086_v36 = vpop.xlane.xlu0 %346 }
 0x172   :  { %73 = vst.msk [vmem:[#allocation3 + $0x10] sm:$0xff] %vm2598_vm3, %v2614_v1  ;;  %74 = vst.msk [vmem:[#allocation3 + $0x18] sm:$0xff] %vm2598_vm3, %v2614_v1 }
 0x173   :  { %800 = vadd.xlane.f32.xlu0 %v799_v21  ;;  %v1039_v12 = vrot.slane %v1032_v62, %v1030_v45  ;;  %803 = vadd.xlane.f32.xlu1 %v802_v59  ;;  %v402_v45 = vsel %vm257_vm7, %v1806_v37, 0.0  ;;  %v403_v62 = vsel %vm2604_vm4, %v1813_v42, 0.0  ;;  %v405_v59 = vsel %vm260_vm11, %v1818_v46, 0.0  ;;  %75 = vst.msk [vmem:[#allocation3 + $0x20] sm:$0xff] %vm2598_vm3, %v2614_v1  ;;  %76 = vst.msk [vmem:[#allocation3 + $0x28] sm:$0xff] %vm2598_vm3, %v2614_v1 }
 0x174   :  { %v414_v41 = vsel %vm2600_vm14, %v402_v45, 0.0  ;;  %v417_v37 = vsel %vm2600_vm14, %v403_v62, 0.0  ;;  %v423_v50 = vsel %vm2600_vm14, %v405_v59, 0.0  ;;  %v406_v42 = vsel %vm261_vm9, %v1821_v48, 0.0  ;;  %77 = vst.msk [vmem:[#allocation3 + $0x30] sm:$0xff] %vm2598_vm3, %v2614_v1  ;;  %78 = vst.msk [vmem:[#allocation3 + $0x38] sm:$0xff] %vm2598_vm3, %v2614_v1 }
 0x175   :  { %v1040_v15 = vcombine.high %v1039_v12, %v1039_v12  ;;  %v407_v12 = vsel %vm2603_vm8, %v1826_v52, 0.0  ;;  %79 = vst.msk [vmem:[#allocation3 + $0x40] sm:$0xff] %vm2598_vm3, %v2614_v1  ;;  %80 = vst.msk [vmem:[#allocation3 + $0x48] sm:$0xff] %vm2598_vm3, %v2614_v1  ;;  %v408_v48 = vsel %vm263_vm6, %v1829_v54, 0.0  ;;  %v2091_v45 = vpop.xlane.xlu0 %352 }
 0x176   :  { %81 = vst.msk [vmem:[#allocation3 + $0x50] sm:$0xff] %vm2598_vm3, %v2614_v1  ;;  %82 = vst.msk [vmem:[#allocation3 + $0x58] sm:$0xff] %vm2598_vm3, %v2614_v1  ;;  %v429_v46 = vsel %vm2600_vm14, %v407_v12, 0.0  ;;  %v432_v52 = vsel %vm2600_vm14, %v408_v48, 0.0 }
 0x177   :  { %806 = vadd.xlane.f32.xlu0 %v805_v47  ;;  %v1042_v10 = vmax.f32 %v1902_v56, %v1040_v15  ;;  %809 = vadd.xlane.f32.xlu1 %v808_v57  ;;  %v404_v56 = vsel %vm259_vm12, %v1810_v40, 0.0  ;;  %v426_v40 = vsel %vm2600_vm14, %v406_v42, 0.0  ;;  %83 = vst.msk [vmem:[#allocation4] sm:$0xff] %vm2598_vm3, %v2614_v1  ;;  %84 = vst.msk [vmem:[#allocation4 + $0x8] sm:$0xff] %vm2598_vm3, %v2614_v1  ;;  %v409_v15 = vsel %vm2605_vm5, %v1834_v58, 0.0  ;;  %v344_v57 = vpop.xlane.xlu1 %343 }
 0x178   :  { %v420_v21 = vsel %vm2600_vm14, %v404_v56, 0.0  ;;  %85 = vst.msk [vmem:[#allocation4 + $0x10] sm:$0xff] %vm2598_vm3, %v2614_v1  ;;  %86 = vst.msk [vmem:[#allocation4 + $0x18] sm:$0xff] %vm2598_vm3, %v2614_v1  ;;  %v435_v47 = vsel %vm2600_vm14, %v409_v15, 0.0  ;;  %vm2610_vm14 = vcmp.eq.s32.totalorder %v1566_v11, 1 }
 0x179   :  { %1044 = vst.msk [vmem:[#allocation2] sm:$0x1] %vm68_vm13, %v1042_v10  ;;  %vm754_vm13 = vcmp.gt.f32.partialorder %v1907_v3, 0.5 }
 0x17a   :  { %87 = vst.msk [vmem:[#allocation4 + $0x20] sm:$0xff] %vm2598_vm3, %v2614_v1  ;;  %88 = vst.msk [vmem:[#allocation4 + $0x28] sm:$0xff] %vm2598_vm3, %v2614_v1 }
 0x17b   :  { %812 = vadd.xlane.f32.xlu0 %v811_v13  ;;  %415 = vadd.xlane.f32.xlu1 %v414_v41  ;;  %89 = vst.msk [vmem:[#allocation4 + $0x30] sm:$0xff] %vm2598_vm3, %v2614_v1  ;;  %90 = vst.msk [vmem:[#allocation4 + $0x38] sm:$0xff] %vm2598_vm3, %v2614_v1  ;;  %v2088_v10 = vpop.xlane.xlu1 %349  ;;  %v2095_v13 = vpop.xlane.xlu0 %358 }
 0x17c   :  { %91 = vst.msk [vmem:[#allocation4 + $0x40] sm:$0xff] %vm2598_vm3, %v2614_v1  ;;  %92 = vst.msk [vmem:[#allocation4 + $0x48] sm:$0xff] %vm2598_vm3, %v2614_v1  ;;  %1381 = vrcp.f32 %v2088_v10 }
 0x17d   :  { %93 = vst.msk [vmem:[#allocation4 + $0x50] sm:$0xff] %vm2598_vm3, %v2614_v1  ;;  %94 = vst.msk [vmem:[#allocation4 + $0x58] sm:$0xff] %vm2598_vm3, %v2614_v1  ;;  %1383 = vrcp.f32 %v344_v57  ;;  %vm2606_vm3 = vmmov 1  }
 0x17e   :  { %vm829_vm15 = vmxor %vm259_vm12, %vm2606_vm3 }
 0x17f   :  { %418 = vadd.xlane.f32.xlu0 %v417_v37  ;;  %421 = vadd.xlane.f32.xlu1 %v420_v21  ;;  %v2093_v54 = vpop.xlane.xlu1 %355  ;;  %v2100_v58 = vpop.xlane.xlu0 %364  ;;  %vm827_vm2 = vmxor %vm257_vm7, %vm2606_vm3 }
 0x180   :  { %1385 = vrcp.f32 %v2093_v54  ;;  %vm2128_vm0 = vmxor %vm263_vm6, %vm2606_vm3 }
 0x181   :  { %vm841_vm8 = vmand %vm756_vm10, %vm829_vm15 }
 0x182   :  { %vm2132_vm4 = vmand %vm754_vm13, %vm827_vm2  ;;  %vm760_vm2 = vcmp.gt.f32.partialorder %v1940_v14, 0.5  ;;  %vm757_vm13 = vcmp.gt.f32.partialorder %v1920_v32, 0.5  ;;  %v2321_v32 = vld [vmem:[%s2592_s2 + $0x8] sm:$0xff] }
 0x183   :  { %424 = vadd.xlane.f32.xlu0 %v423_v50  ;;  %v2097_v41 = vpop.xlane.xlu1 %361  ;;  %v2107_v59 = vpop.xlane.xlu0 %370 }
 0x184   :  { %1387 = vrcp.f32 %v2097_v41 }
 0x185   :  { %1389 = vrcp.f32 %v2091_v45 }
 0x186   :  { %1391 = vrcp.f32 %v2086_v36 }
 0x187   :  { %427 = vadd.xlane.f32.xlu0 %v426_v40  ;;  %v2102_v56 = vpop.xlane.xlu1 %367  ;;  %1393 = vrcp.f32 %v2100_v58 }
 0x188   :  { %1395 = vrcp.f32 %v2095_v13 }
 0x189   :  { %v1382_v62 = vpop.eup %1381  ;;  %1397 = vlog2.f32 %v344_v57 }
 0x18a   :  { %v1384_v37 = vpop.eup %1383  ;;  %v392_v21 = vmul.f32 %v1382_v62, %v1851_v5 }
 0x18b   :  { %430 = vadd.xlane.f32.xlu0 %v429_v46  ;;  %v390_v50 = vmul.f32 %v1384_v37, %v1836_v60  ;;  %v2112_v42 = vpop.xlane.xlu1 %373 }
 0x18c   :  { %v903_v40 = vsub.f32 1.0, %v392_v21 }
 0x18d   :  { %v901_v28 = vsub.f32 1.0, %v390_v50  ;;  %v1386_v12 = vpop.eup %1385 }
 0x18e   :  { %v915_v30 = vmax.f32 %v903_v40, 1e-05  ;;  %v394_v15 = vmul.f32 %v1386_v12, %v1867_v9 }
 0x18f   :  { %433 = vadd.xlane.f32.xlu0 %v432_v52  ;;  %v913_v1 = vmax.f32 %v901_v28, 1e-05 }
 0x190   :  { %v905_v37 = vsub.f32 1.0, %v394_v15 }
 0x191   :  { %v1388_v48 = vpop.eup %1387 }
 0x192   :  { %v396_v62 = vmul.f32 %v1388_v48, %v1875_v34  ;;  %v917_v60 = vmax.f32 %v905_v37, 1e-05 }
 0x193   :  { %436 = vadd.xlane.f32.xlu0 %v435_v47  ;;  %v1390_v47 = vpop.eup %1389 }
 0x194   :  { %v393_v34 = vmul.f32 %v1390_v47, %v1865_v18  ;;  %v907_v50 = vsub.f32 1.0, %v396_v62 }
 0x196   :  { %v904_v40 = vsub.f32 1.0, %v393_v34  ;;  %v919_v12 = vmax.f32 %v907_v50, 1e-05 }
 0x1ea   :  { %v786_v5 = vpop.xlane.xlu0 %785 }
 0x1eb   :  { %vm816_vm12 = vcmp.gt.f32.partialorder %v786_v5, 0.5 }
 0x1ec   :  { %v780_v63 = vpop.xlane.xlu1 %779  ;;  %vm879_vm7 = vmand %vm2610_vm14, %vm816_vm12  ;;  %vm2619_vm12 = vcmp.eq.s32.totalorder %v1566_v11, %v1739_v23 }
 0x1ed   :  { %vm814_vm6 = vcmp.gt.f32.partialorder %v780_v63, 0.5  ;;  %vm891_vm5 = vmor %vm841_vm8, %vm879_vm7  ;;  %vm758_vm8 = vcmp.gt.f32.partialorder %v1925_v43, 0.5 }
 0x1ee   :  { %v927_v24 = vsel %vm891_vm5, %v915_v30, 1.0  ;;  %vm877_vm15 = vmand %vm2610_vm14, %vm814_vm6 }
 0x1ef   :  { %1399 = vlog2.f32 %v927_v24  ;;  %vm889_vm10 = vmor %vm2132_vm4, %vm877_vm15 }
 0x1f0   :  { %v783_v46 = vpop.xlane.xlu0 %782  ;;  %v2145_v52 = vpop.xlane.xlu1 %376  ;;  %v925_v57 = vsel %vm889_vm10, %v913_v1, 1.0  ;;  %vm831_vm5 = vmxor %vm261_vm9, %vm2606_vm3 }
 0x1f1   :  { %1401 = vrcp.f32 %v2145_v52  ;;  %vm830_vm4 = vmxor %vm260_vm11, %vm2606_vm3  ;;  %vm2624_vm11 = vcmp.eq.s32.totalorder %v1566_v11, %v1781_v29 }
 0x1f2   :  { %1403 = vlog2.f32 %v925_v57  ;;  %vm2163_vm7 = vmxor %vm2619_vm12, %vm2606_vm3  ;;  %vm2631_vm12 = vcmp.eq.s32.totalorder %v1566_v11, %v1753_v25 }
 0x1f3   :  { %1405 = vrcp.f32 %v2102_v56  ;;  %vm2173_vm9 = vmand %vm760_vm2, %vm2128_vm0 }
 0x1f4   :  { %v789_v26 = vpop.xlane.xlu0 %788  ;;  %1407 = vlog2.f32 %v2086_v36  ;;  %vm2182_vm6 = vmxor %vm2624_vm11, %vm2606_vm3  ;;  %v792_v21 = vpop.xlane.xlu1 %791 }
 0x1f5   :  { %vm817_vm15 = vcmp.gt.f32.partialorder %v789_v26, 0.5  ;;  %vm2189_vm10 = vmand %vm758_vm8, %vm831_vm5  ;;  %v1392_v36 = vpop.eup %1391  ;;  %vm818_vm2 = vcmp.gt.f32.partialorder %v792_v21, 0.5  ;;  %1409 = vlog2.f32 %v2088_v10  ;;  %vm815_vm8 = vcmp.gt.f32.partialorder %v783_v46, 0.5 }
 0x1f6   :  { %vm2195_vm0 = vmand %vm757_vm13, %vm830_vm4  ;;  %1411 = vrcp.f32 %v2107_v59  ;;  %v391_v10 = vmul.f32 %v1392_v36, %v1857_v7  ;;  %v1394_v63 = vpop.eup %1393  ;;  %v916_v46 = vmax.f32 %v904_v40, 1e-05 }
 0x1f7   :  { %vm2203_vm11 = vmxor %vm2631_vm12, %vm2606_vm3  ;;  %1413 = vlog2.f32 %v2091_v45  ;;  %v1396_v3 = vpop.eup %1395  ;;  %v397_v26 = vmul.f32 %v1394_v63, %v1881_v38 }
 0x1f8   :  { %vm2210_vm5 = vmand %vm2610_vm14, %vm817_vm15  ;;  %v795_v25 = vpop.xlane.xlu0 %794  ;;  %v798_v5 = vpop.xlane.xlu1 %797  ;;  %1415 = vlog2.f32 %v2093_v54  ;;  %v902_v1 = vsub.f32 1.0, %v391_v10  ;;  %v395_v62 = vmul.f32 %v1396_v3, %v1873_v33  ;;  %v2338_v10 = vld [vmem:[%s2592_s2 + $0x10] sm:$0xff] }
 0x1f9   :  { %vm2217_vm4 = vmand %vm2610_vm14, %vm818_vm2  ;;  %vm820_vm12 = vcmp.gt.f32.partialorder %v798_v5, 0.5  ;;  %1417 = vrcp.f32 %v2112_v42  ;;  %v1398_v24 = vpop.eup %1397  ;;  %v908_v43 = vsub.f32 1.0, %v397_v26 }
 0x1fa   :  { %vm893_vm15 = vmor %vm2189_vm10, %vm2217_vm4  ;;  %vm759_vm4 = vcmp.gt.f32.partialorder %v1934_v0, 0.5  ;;  %vm2642_vm10 = vcmp.gt.f32.partialorder %v1950_v53, 0.5  ;;  %v914_v14 = vmax.f32 %v902_v1, 1e-05  ;;  %v906_v40 = vsub.f32 1.0, %v395_v62  ;;  %v1045_v62 = vld [vmem:[#allocation3] sm:$0xff] }
 0x1fb   :  { %vm2230_vm2 = vmand %vm2610_vm14, %vm815_vm8  ;;  %v929_v45 = vsel %vm893_vm15, %v917_v60, 1.0  ;;  %v451_v3 = vmul.f32 0.6931472, %v1398_v24  ;;  %v2375_v24 = vld [vmem:[%s2592_s2 + $0x18] sm:$0xff]  ;;  %v920_v1 = vmax.f32 %v908_v43, 1e-05 }
 0x1fc   :  { %vm2237_vm13 = vmxor %vm1728_vm1, %vm2606_vm3  ;;  %v801_v30 = vpop.xlane.xlu0 %800  ;;  %v2261_v48 = vpop.xlane.xlu1 %803  ;;  %1419 = vlog2.f32 %v929_v45  ;;  %v2675_v43 = vld [vmem:[#allocation12_spill] sm:$0xff] }
 0x1fd   :  { %vm892_vm8 = vmor %vm2195_vm0, %vm2210_vm5  ;;  %v1400_v47 = vpop.eup %1399  ;;  %vm2657_vm0 = vcmp.eq.s32.totalorder %v1566_v11, %v1717_v16  ;;  %vm528_vm5 = vcmp.ne.s32.totalorder %v2321_v32, 1 }
 0x1fe   :  { %vm883_vm3 = vmand %vm2610_vm14, %vm820_vm12  ;;  %vm2645_vm12 = vcmp.eq.s32.totalorder %v1566_v11, %v1719_v17  ;;  %v928_v33 = vsel %vm892_vm8, %v916_v46, 1.0 }
 0x1ff   :  { %vm2255_vm1 = vmand %vm2642_vm10, %vm2163_vm7  ;;  %v410_v15 = vsel %vm2645_vm12, %v1839_v61, 0.0  ;;  %vm2646_vm7 = vcmp.eq.s32.totalorder %v1566_v11, %v1721_v19  ;;  %vm2647_vm10 = vcmp.gt.f32.partialorder %v1922_v35, 0.5  ;;  %v1402_v61 = vpop.eup %1401  ;;  %v942_v35 = vmul.f32 0.6931472, %v1400_v47 }
 0x200   :  { %vm895_vm15 = vmor %vm2173_vm9, %vm883_vm3  ;;  %v411_v53 = vsel %vm2646_vm7, %v1846_v2, 0.0  ;;  %vm819_vm3 = vcmp.gt.f32.partialorder %v795_v25, 0.5  ;;  %v1404_v27 = vpop.eup %1403  ;;  %v2300_v38 = vpop.xlane.xlu0 %806  ;;  %v401_v0 = vmul.f32 %v1402_v61, %v1913_v8  ;;  %v412_v8 = vsel %vm2657_vm0, %v1854_v6, 0.0  ;;  %v1046_v2 = vld [vmem:[#allocation3 + $0x8] sm:$0xff] }
 0x201   :  { %vm2275_vm14 = vmand %vm2647_vm10, %vm2182_vm6  ;;  %v931_v9 = vsel %vm895_vm15, %v919_v12, 1.0  ;;  %vm821_vm6 = vcmp.gt.f32.partialorder %v801_v30, 0.5  ;;  %vm765_vm15 = vcmp.gt.f32.partialorder %v1979_v49, 0.5  ;;  %v1406_v34 = vpop.eup %1405  ;;  %v2312_v36 = vpop.xlane.xlu1 %809  ;;  %v938_v29 = vmul.f32 0.6931472, %v1404_v27 }
 0x202   :  { %vm2286_vm12 = vmand %vm759_vm4, %vm2203_vm11  ;;  %1421 = vlog2.f32 %v931_v9  ;;  %vm2652_vm11 = vcmask 261120   ;;  %vm2653_vm4 = vcmp.eq.s32.totalorder %v1566_v11, 1  ;;  %v1408_v18 = vpop.eup %1407  ;;  %v912_v6 = vsub.f32 1.0, %v401_v0 }
 0x203   :  { %vm890_vm7 = vmor %vm2275_vm14, %vm2230_vm2  ;;  %v438_v23 = vsel %vm2652_vm11, %v410_v15, 0.0  ;;  %1423 = vlog2.f32 %v2095_v13  ;;  %v1410_v63 = vpop.eup %1409  ;;  %v398_v28 = vmul.f32 %v1406_v34, %v1883_v39  ;;  %vm762_vm2 = vcmp.gt.f32.partialorder %v1957_v55, 0.5 }
 0x204   :  { %vm2307_vm10 = vmand %vm2653_vm4, %vm819_vm3  ;;  %v926_v13 = vsel %vm890_vm7, %v914_v14, 1.0  ;;  %1425 = vlog2.f32 %v928_v33  ;;  %v813_v45 = vpop.xlane.xlu0 %812  ;;  %v453_v7 = vmul.f32 0.6931472, %v1408_v18  ;;  %v1412_v30 = vpop.eup %1411  ;;  %v455_v47 = vmul.f32 0.6931472, %v1410_v63 }
 0x205   :  { %vm2656_vm9 = vmmov %vm2652_vm11  ;;  %1427 = vlog2.f32 %v2097_v41  ;;  %vm825_vm7 = vcmp.gt.f32.partialorder %v813_v45, 0.5  ;;  %v416_v39 = vpop.xlane.xlu1 %415  ;;  %v924_v41 = vmax.f32 %v912_v6, 1e-05  ;;  %v1414_v15 = vpop.eup %1413  ;;  %v909_v26 = vsub.f32 1.0, %v398_v28  ;;  %v1047_v6 = vld [vmem:[#allocation3 + $0x10] sm:$0xff] }
 0x206   :  { %v967_v21 = vsel %vm2656_vm9, %v942_v35, 0.0  ;;  %vm2658_vm8 = vmmov %vm2653_vm4  ;;  %v2333_v50 = vsel %vm2656_vm9, %v411_v53, 0.0  ;;  %1429 = vlog2.f32 %v926_v13  ;;  %v474_v46 = vsub.f32 %v416_v39, %v451_v3  ;;  %v1416_v57 = vpop.eup %1415 }
 0x207   :  { %vm2328_vm3 = vmand %vm2658_vm8, %vm821_vm6  ;;  %968 = vadd.xlane.f32.xlu1 %v967_v21  ;;  %vm530_vm8 = vcmp.ne.s32.totalorder %v2375_v24, 1  ;;  %1431 = vlog2.f32 %v2100_v58  ;;  %v918_v53 = vmax.f32 %v906_v40, 1e-05  ;;  %v1418_v27 = vpop.eup %1417  ;;  %v399_v33 = vmul.f32 %v1412_v30, %v1889_v44 }
 0x208   :  { %vm2661_vm6 = vmmov %vm2656_vm9  ;;  %vm2666_vm9 = vcmp.eq.s32.totalorder %v1566_v11, 1  ;;  %v551_v35 = vsub.f32 0.0, %v474_v46  ;;  %v419_v58 = vpop.xlane.xlu0 %418  ;;  %v457_v21 = vmul.f32 0.6931472, %v1414_v15  ;;  %v921_v18 = vmax.f32 %v909_v26, 1e-05 }
 0x209   :  { %v961_v60 = vsel %vm2661_vm6, %v938_v29, 0.0  ;;  %vm2351_vm4 = vmand %vm765_vm15, %vm2237_vm13  ;;  %vm2665_vm13 = vnez %v2612_v20  ;;  %v475_v0 = vsub.f32 %v419_v58, %v453_v7  ;;  %v422_v34 = vpop.xlane.xlu1 %421  ;;  %v1420_v29 = vpop.eup %1419  ;;  %v2418_v25 = vmul.f32 %v1418_v27, %v2675_v43  ;;  %v1049_v20 = vld [vmem:[#allocation3 + $0x20] sm:$0xff]  ;;  %v1458_v43 = vld [vmem:[%s2592_s2 + $0x30] sm:$0xff] }
 0x20a   :  { %vm894_vm0 = vmor %vm2286_vm12, %vm2307_vm10  ;;  %962 = vadd.xlane.f32.xlu0 %v961_v60  ;;  %v413_v49 = vsel %vm2665_vm13, %v1898_v51, 0.0  ;;  %v476_v14 = vsub.f32 %v422_v34, %v455_v47  ;;  %vm2672_vm12 = vcmp.eq.s32.totalorder %v1566_v11, %v1719_v17  ;;  %v459_v40 = vmul.f32 0.6931472, %v1416_v57 }
 0x20b   :  { %vm2664_vm14 = vmmov %vm2661_vm6  ;;  %v930_v54 = vsel %vm894_vm0, %v918_v53, 1.0  ;;  %vm823_vm0 = vcmp.gt.f32.partialorder %v2300_v38, 0.5  ;;  %v552_v37 = vsub.f32 0.0, %v475_v0  ;;  %v910_v55 = vsub.f32 1.0, %v399_v33  ;;  %v1048_v38 = vld [vmem:[#allocation3 + $0x18] sm:$0xff] }
 0x20c   :  { %v2361_v12 = vsel %vm2664_vm14, %v412_v8, 0.0  ;;  %vm896_vm15 = vmor %vm2255_vm1, %vm2328_vm3  ;;  %vm822_vm14 = vcmp.gt.f32.partialorder %v2261_v48, 0.5  ;;  %v553_v13 = vsub.f32 0.0, %v476_v14  ;;  %v425_v17 = vpop.xlane.xlu0 %424  ;;  %v946_v30 = vmul.f32 0.6931472, %v1420_v29 }
 0x20d   :  { %vm888_vm6 = vmand %vm2666_vm9, %vm825_vm7  ;;  %v932_v9 = vsel %vm896_vm15, %v920_v1, 1.0  ;;  %vm763_vm7 = vcmp.gt.f32.partialorder %v1965_v22, 0.5  ;;  %v564_v60 = vsel %vm528_vm5, %v552_v37, 0.0  ;;  %v477_v5 = vsub.f32 %v425_v17, %v457_v21  ;;  %v1051_v17 = vld [vmem:[#allocation3 + $0x30] sm:$0xff] }
 0x20e   :  { %vm900_vm11 = vmor %vm2351_vm4, %vm888_vm6  ;;  %439 = vadd.xlane.f32.xlu0 %v438_v23  ;;  %vm2671_vm4 = vmmov 1   ;;  %v1058_v28 = vadd.f32 %v1046_v2, %v564_v60  ;;  %vm2681_vm5 = vcmp.eq.s32.totalorder %v1566_v11, %v1721_v19  ;;  %v922_v47 = vmax.f32 %v910_v55, 1e-05 }
 0x20f   :  { %v936_v61 = vsel %vm900_vm11, %v924_v41, 1.0  ;;  %vm2667_vm1 = vmmov %vm2666_vm9  ;;  %vm2670_vm11 = vcmp.ne.s32.totalorder %v1599_v31, 1  ;;  %v1422_v8 = vpop.eup %1421  ;;  %v554_v39 = vsub.f32 0.0, %v477_v5  ;;  %v1456_v41 = vld [vmem:[%s2592_s2 + $0x20] sm:$0xff]  ;;  %v911_v57 = vsub.f32 1.0, %v2418_v25 }
 0x210   :  { %1433 = vlog2.f32 %v936_v61  ;;  %vm2400_vm3 = vmand %vm2667_vm1, %vm822_vm14  ;;  %v563_v44 = vsel %vm2670_vm11, %v551_v35, 0.0  ;;  %v950_v63 = vmul.f32 0.6931472, %v1422_v8  ;;  %vm2680_vm11 = vcmp.ne.s32.totalorder %v2338_v10, 1  ;;  %v1424_v3 = vpop.eup %1423  ;;  %v428_v46 = vpop.xlane.xlu0 %427 }
 0x211   :  { %1435 = vlog2.f32 %v932_v9  ;;  %vm835_vm10 = vmxor %vm2672_vm12, %vm2671_vm4  ;;  %v1057_v48 = vadd.f32 %v1045_v62, %v563_v44  ;;  %v565_v45 = vsel %vm2680_vm11, %v553_v13, 0.0  ;;  %v1426_v1 = vpop.eup %1425  ;;  %vm764_vm11 = vcmp.gt.f32.partialorder %v1972_v4, 0.5  ;;  %v1050_v44 = vld [vmem:[#allocation3 + $0x28] sm:$0xff] }
 0x212   :  { %vm2413_vm15 = vmand %vm762_vm2, %vm835_vm10  ;;  %442 = vadd.xlane.f32.xlu0 %v2333_v50  ;;  %vm2676_vm2 = vcmask 7168   ;;  %1437 = vlog2.f32 %v930_v54  ;;  %v1059_v32 = vadd.f32 %v1047_v6, %v565_v45  ;;  %vm2682_vm10 = vcmask 261120   ;;  %v1428_v53 = vpop.eup %1427 }
 0x213   :  { %vm897_vm9 = vmor %vm2413_vm15, %vm2400_vm3  ;;  %1070 = vst.msk [vmem:[#allocation3] sm:$0xff] %vm2676_vm2, %v1057_v48  ;;  %v979_v7 = vsel %vm2682_vm10, %v950_v63, 0.0  ;;  %v566_v22 = vsel %vm530_vm8, %v554_v39, 0.0  ;;  %v478_v15 = vsub.f32 %v428_v46, %v459_v40  ;;  %v461_v26 = vmul.f32 0.6931472, %v1424_v3  ;;  %v1430_v61 = vpop.eup %1429  ;;  %v1052_v3 = vld [vmem:[#allocation3 + $0x38] sm:$0xff] }
 0x214   :  { %vm2677_vm6 = vmmov %vm2667_vm1  ;;  %vm824_vm1 = vcmp.gt.f32.partialorder %v2312_v36, 0.5  ;;  %v933_v10 = vsel %vm897_vm9, %v921_v18, 1.0  ;;  %980 = vadd.xlane.f32.xlu1 %v979_v7  ;;  %vm2688_vm9 = vcmp.eq.s32.totalorder %v1566_v11, 1  ;;  %v1060_v24 = vadd.f32 %v1048_v38, %v566_v22  ;;  %v1432_v62 = vpop.eup %1431 }
 0x215   :  { %vm2432_vm14 = vmand %vm2677_vm6, %vm823_vm0  ;;  %vm531_vm0 = vcmp.ne.s32.totalorder %v1456_v41, 1  ;;  %vm2685_vm6 = vcmask 7168   ;;  %1439 = vlog2.f32 %v933_v10  ;;  %vm2691_vm13 = vcmp.eq.s32.totalorder %v1566_v11, %v1717_v16  ;;  %v431_v11 = vpop.xlane.xlu0 %430  ;;  %v1457_v16 = vld [vmem:[%s2592_s2 + $0x28] sm:$0xff] }
 0x216   :  { %vm836_vm12 = vmxor %vm2681_vm5, %vm2671_vm4  ;;  %1071 = vst.msk [vmem:[#allocation3 + $0x8] sm:$0xff] %vm2685_vm6, %v1058_v28  ;;  %445 = vadd.xlane.f32.xlu0 %v2361_v12  ;;  %v555_v51 = vsub.f32 0.0, %v478_v15  ;;  %v944_v36 = vmul.f32 0.6931472, %v1426_v1  ;;  %v479_v27 = vsub.f32 %v431_v11, %v461_v26  ;;  %v923_v0 = vmax.f32 %v911_v57, 1e-05 }
 0x217   :  { %vm2454_vm2 = vmand %vm763_vm7, %vm836_vm12  ;;  %v463_v54 = vmul.f32 0.6931472, %v1428_v53  ;;  %v940_v23 = vmul.f32 0.6931472, %v1430_v61  ;;  %v465_v6 = vmul.f32 0.6931472, %v1432_v62 }
 0x218   :  { %vm898_vm3 = vmor %vm2454_vm2, %vm2432_vm14  ;;  %v567_v4 = vsel %vm531_vm0, %v555_v51, 0.0  ;;  %v556_v14 = vsub.f32 0.0, %v479_v27  ;;  %v1459_v28 = vld [vmem:[%s2592_s2 + $0x38] sm:$0xff]  ;;  %v1082_v61 = vld [vmem:[#allocation4] sm:$0xff] }
 0x219   :  { %vm2686_vm15 = vmmov %vm2685_vm6  ;;  %v934_v35 = vsel %vm898_vm3, %v922_v47, 1.0  ;;  %v1061_v34 = vadd.f32 %v1049_v20, %v567_v4  ;;  %v434_v37 = vpop.xlane.xlu0 %433  ;;  %v1084_v57 = vld [vmem:[#allocation4 + $0x10] sm:$0xff] }
 0x21a   :  { %1072 = vst.msk [vmem:[#allocation3 + $0x10] sm:$0xff] %vm2686_vm15, %v1059_v32  ;;  %vm2687_vm7 = vmmov %vm2682_vm10  ;;  %1441 = vlog2.f32 %v934_v35  ;;  %v480_v31 = vsub.f32 %v434_v37, %v463_v54 }
 0x21b   :  { %v447_v12 = vsel %vm2687_vm7, %v413_v49, 0.0  ;;  %vm2478_vm5 = vmand %vm2688_vm9, %vm824_vm1  ;;  %1074 = vst.msk [vmem:[#allocation3 + $0x20] sm:$0xff] %vm2685_vm6, %v1061_v34 }
 0x21c   :  { %vm837_vm8 = vmxor %vm2691_vm13, %vm2671_vm4  ;;  %448 = vadd.xlane.f32.xlu0 %v447_v12  ;;  %vm532_vm4 = vcmp.ne.s32.totalorder %v1457_v16, 1  ;;  %v557_v40 = vsub.f32 0.0, %v480_v31  ;;  %v1053_v16 = vld [vmem:[#allocation3 + $0x40] sm:$0xff] }
 0x21d   :  { %vm2692_vm12 = vmmov %vm2687_vm7  ;;  %v1434_v33 = vpop.eup %1433  ;;  %v568_v8 = vsel %vm532_vm4, %v556_v14, 0.0  ;;  %v437_v5 = vpop.xlane.xlu0 %436  ;;  %v1122_v35 = vld [vmem:[#allocation3 + $0x8] sm:$0xff] }
 0x21e   :  { %v973_v49 = vsel %vm2692_vm12, %v946_v30, 0.0  ;;  %vm2494_vm1 = vmand %vm764_vm11, %vm837_vm8  ;;  %v960_v29 = vmul.f32 0.6931472, %v1434_v33  ;;  %v1436_v48 = vpop.eup %1435  ;;  %vm533_vm11 = vcmp.ne.s32.totalorder %v1458_v43, 1  ;;  %v1062_v25 = vadd.f32 %v1050_v44, %v568_v8 }
 0x21f   :  { %vm2695_vm10 = vmmov %vm2685_vm6  ;;  %974 = vadd.xlane.f32.xlu1 %v973_v49  ;;  %v1438_v13 = vpop.eup %1437  ;;  %v952_v60 = vmul.f32 0.6931472, %v1436_v48  ;;  %v569_v63 = vsel %vm533_vm11, %v557_v40, 0.0  ;;  %v481_v50 = vsub.f32 %v437_v5, %v465_v6  ;;  %v1054_v48 = vld [vmem:[#allocation3 + $0x48] sm:$0xff] }
 0x220   :  { %1073 = vst.msk [vmem:[#allocation3 + $0x18] sm:$0xff] %vm2695_vm10, %v1060_v24  ;;  %vm899_vm14 = vmor %vm2494_vm1, %vm2478_vm5  ;;  %v1063_v45 = vadd.f32 %v1051_v17, %v569_v63  ;;  %v948_v39 = vmul.f32 0.6931472, %v1438_v13  ;;  %v1462_v5 = vld [vmem:[%s2592_s2 + $0x50] sm:$0xff] }
 0x221   :  { %vm2696_vm2 = vmmov %vm2687_vm7  ;;  %v935_v2 = vsel %vm899_vm14, %v923_v0, 1.0  ;;  %vm534_vm7 = vcmp.ne.s32.totalorder %v1459_v28, 1  ;;  %v558_v32 = vsub.f32 0.0, %v481_v50  ;;  %v1123_v44 = vld [vmem:[#allocation3 + $0x10] sm:$0xff] }
 0x222   :  { %v970_v21 = vsel %vm2696_vm2, %v944_v36, 0.0  ;;  %vm2697_vm0 = vmmov %vm2696_vm2  ;;  %1443 = vlog2.f32 %v935_v2  ;;  %v1440_v7 = vpop.eup %1439 }
 0x223   :  { %971 = vadd.xlane.f32.xlu1 %v970_v21  ;;  %v994_v18 = vsel %vm2697_vm0, %v960_v29, 0.0  ;;  %vm2698_vm3 = vmmov %vm2697_vm0  ;;  %v570_v30 = vsel %vm534_vm7, %v558_v32, 0.0  ;;  %v954_v10 = vmul.f32 0.6931472, %v1440_v7  ;;  %1445 = vlog2.f32 %v2102_v56  ;;  %v1461_v21 = vld [vmem:[%s2592_s2 + $0x48] sm:$0xff] }
 0x224   :  { %995 = vadd.xlane.f32.xlu0 %v994_v18  ;;  %v964_v55 = vsel %vm2698_vm3, %v940_v23, 0.0  ;;  %vm2699_vm15 = vmmov %vm2685_vm6  ;;  %v1064_v1 = vadd.f32 %v1052_v3, %v570_v30  ;;  %1447 = vlog2.f32 %v2107_v59  ;;  %vm536_vm11 = vcmp.ne.s32.totalorder %v1461_v21, 1  ;;  %v1088_v18 = vld [vmem:[#allocation4 + $0x30] sm:$0xff] }
 0x225   :  { %1075 = vst.msk [vmem:[#allocation3 + $0x28] sm:$0xff] %vm2699_vm15, %v1062_v25  ;;  %vm2700_vm9 = vmmov %vm2697_vm0  ;;  %1449 = vlog2.f32 %v2112_v42  ;;  %v1121_v42 = vld [vmem:[#allocation3] sm:$0xff]  ;;  %vm537_vm7 = vcmp.ne.s32.totalorder %v1462_v5, 1 }
 0x226   :  { %v982_v38 = vsel %vm2700_vm9, %v952_v60, 0.0  ;;  %vm2701_vm5 = vmmov %vm2685_vm6  ;;  %1451 = vlog2.f32 %v2145_v52  ;;  %v1460_v52 = vld [vmem:[%s2592_s2 + $0x40] sm:$0xff] }
 0x227   :  { %965 = vadd.xlane.f32.xlu1 %v964_v55  ;;  %1076 = vst.msk [vmem:[#allocation3 + $0x30] sm:$0xff] %vm2701_vm5, %v1063_v45  ;;  %vm2702_vm13 = vmmov %vm2697_vm0  ;;  %v1442_v19 = vpop.eup %1441  ;;  %vm535_vm2 = vcmp.ne.s32.totalorder %v1460_v52, 1  ;;  %v1124_v8 = vld [vmem:[#allocation3 + $0x18] sm:$0xff]  ;;  %v1125_v55 = vld [vmem:[#allocation3 + $0x20] sm:$0xff] }
 0x228   :  { %v976_v41 = vsel %vm2702_vm13, %v948_v39, 0.0  ;;  %vm2703_vm8 = vmmov %vm2701_vm5  ;;  %v956_v22 = vmul.f32 0.6931472, %v1442_v19  ;;  %v1055_v45 = vld [vmem:[#allocation3 + $0x50] sm:$0xff]  ;;  %v1086_v39 = vld [vmem:[#allocation4 + $0x20] sm:$0xff] }
 0x229   :  { %1077 = vst.msk [vmem:[#allocation3 + $0x38] sm:$0xff] %vm2703_vm8, %v1064_v1  ;;  %vm2704_vm12 = vmmov %vm2697_vm0 }
 0x22a   :  { %v985_v46 = vsel %vm2704_vm12, %v954_v10, 0.0  ;;  %vm2705_vm1 = vmmov %vm2697_vm0 }
 0x22b   :  { %983 = vadd.xlane.f32.xlu1 %v982_v38  ;;  %v988_v12 = vsel %vm2705_vm1, %v956_v22, 0.0  ;;  %vm2706_vm10 = vmmov %vm2697_vm0 }
 0x22c   :  { %vm2707_vm4 = vmmov %vm2701_vm5  ;;  %v1126_v38 = vld [vmem:[#allocation3 + $0x28] sm:$0xff] }
 0x22d   :  { %vm2708_vm14 = vmmov %vm2707_vm4 }
 0x22e   :  { %vm2709_vm6 = vmmov %vm2707_vm4 }
 0x22f   :  { %977 = vadd.xlane.f32.xlu1 %v976_v41  ;;  %v1444_v15 = vpop.eup %1443  ;;  %v1134_v11 = vsel %vm2709_vm6, %v1122_v35, 0.0  ;;  %vm2710_vm0 = vmmov %vm2707_vm4 }
 0x230   :  { %v958_v53 = vmul.f32 0.6931472, %v1444_v15  ;;  %v1446_v26 = vpop.eup %1445  ;;  %v1133_v34 = vsel %vm2710_vm0, %v1121_v42, 0.0  ;;  %vm2711_vm3 = vmmov %vm2710_vm0  ;;  %v1463_v15 = vld [vmem:[%s2592_s2 + $0x58] sm:$0xff]  ;;  %s1513_s2 = smov [#allocation6]  }
 0x231   :  { %v467_v62 = vmul.f32 0.6931472, %v1446_v26  ;;  %v1448_v56 = vpop.eup %1447  ;;  %v1135_v14 = vadd.f32 %v1134_v11, %v1133_v34  ;;  %vm2712_vm15 = vmmov %vm2710_vm0  ;;  %vm538_vm12 = vcmp.ne.s32.totalorder %v1463_v15, 1  ;;  %s1212_s7 = sshll.u32 %s1513_s2, 4  ;;  %s1213_s7 = int_to_ptr.vmem [resolvable:$true] %s1212_s7 }
 0x232   :  { %v991_v47 = vsel %vm2706_vm10, %v958_v53, 0.0  ;;  %v469_v27 = vmul.f32 0.6931472, %v1448_v56  ;;  %v1450_v33 = vpop.eup %1449  ;;  %v1136_v6 = vsel %vm2712_vm15, %v1123_v44, 0.0  ;;  %vm2713_vm9 = vmmov %vm2710_vm0  ;;  %s1464_s8 = scalar_lea.vmem %s1213_s7, 16  ;;  %s1468_s9 = scalar_lea.vmem %s1213_s7, 32 }
 0x233   :  { %986 = vadd.xlane.f32.xlu1 %v985_v46  ;;  %v471_v37 = vmul.f32 0.6931472, %v1450_v33  ;;  %v1452_v31 = vpop.eup %1451  ;;  %v1137_v60 = vadd.f32 %v1136_v6, %v1135_v14  ;;  %v1138_v50 = vsel %vm2713_vm9, %v1124_v8, 0.0  ;;  %vm2714_vm5 = vmmov %vm2710_vm0  ;;  %v1127_v46 = vld [vmem:[#allocation3 + $0x30] sm:$0xff]  ;;  %v1087_v6 = vld [vmem:[#allocation4 + $0x28] sm:$0xff]  ;;  %p1465_p0 = scmp.ne.s32.totalorder %s1213_s7, %s1464_s8  ;;  %p1469_p1 = scmp.lt.s32.totalorder %s1213_s7, %s1213_s7 }
 0x234   :  { %v473_v32 = vmul.f32 0.6931472, %v1452_v31  ;;  %vm2715_vm13 = vmmov %vm2710_vm0  ;;  %p1470_p2 = scmp.lt.s32.totalorder %s1468_s9, %s1464_s8 }
 0x235   :  { %v1140_v1 = vsel %vm2715_vm13, %v1125_v55, 0.0  ;;  %vm2716_vm8 = vmmov %vm2710_vm0  ;;  %v1139_v22 = vadd.f32 %v1138_v50, %v1137_v60  ;;  %v1090_v50 = vld [vmem:[#allocation4 + $0x40] sm:$0xff] }
 0x236   :  { %vm2717_vm1 = vmmov %vm2710_vm0  ;;  %p1471_p3 = por %p1470_p2, %p1469_p1 }
 0x237   :  { %989 = vadd.xlane.f32.xlu1 %v988_v12  ;;  %v1142_v53 = vsel %vm2717_vm1, %v1126_v38, 0.0  ;;  %v1141_v26 = vadd.f32 %v1140_v1, %v1139_v22  ;;  %vm2718_vm10 = vmmov %vm2710_vm0 }
 0x238   :  { %vm2722_vm6 = vmmov %vm2710_vm0  ;;  %p1472_p4 = pnand %p1471_p3, %p1465_p0 }
 0x239   :  { %v1143_v35 = vadd.f32 %v1142_v53, %v1141_v26  ;;  %vm2725_vm15 = vmmov %vm2710_vm0 }
 0x23a   :  { %vm2727_vm9 = vmmov %vm2710_vm0 }
 0x23b   :  { %992 = vadd.xlane.f32.xlu1 %v991_v47  ;;  %vm2729_vm13 = vmmov %vm2710_vm0 }
 0x23c   :  { %vm2732_vm1 = vmmov %vm2710_vm0 }
 0x290   :  { %v969_v9 = vpop.xlane.xlu1 %968 }
 0x291   :  { %v999_v24 = vsub.f32 0.0, %v969_v9 }
 0x293   :  { %v963_v20 = vpop.xlane.xlu0 %962  ;;  %v1096_v51 = vadd.f32 %v1084_v57, %v999_v24  ;;  %v1056_v57 = vld [vmem:[#allocation3 + $0x58] sm:$0xff] }
 0x294   :  { %v997_v49 = vsub.f32 0.0, %v963_v20  ;;  %v1128_v24 = vld [vmem:[#allocation3 + $0x38] sm:$0xff] }
 0x295   :  { %1108 = vst.msk [vmem:[#allocation4 + $0x10] sm:$0xff] %vm2707_vm4, %v1096_v51  ;;  %vm2719_vm4 = vmmov %vm2710_vm0 }
 0x296   :  { %v1094_v36 = vadd.f32 %v1082_v61, %v997_v49  ;;  %v1085_v61 = vld [vmem:[#allocation4 + $0x18] sm:$0xff]  ;;  %v1144_v51 = vsel %vm2719_vm4, %v1127_v46, 0.0  ;;  %v1091_v46 = vld [vmem:[#allocation4 + $0x48] sm:$0xff]  ;;  %vm2734_vm4 = vmmov %vm2710_vm0 }
 0x297   :  { %v440_v58 = vpop.xlane.xlu0 %439 }
 0x298   :  { %1106 = vst.msk [vmem:[#allocation4] sm:$0xff] %vm2708_vm14, %v1094_v36  ;;  %v482_v59 = vsub.f32 %v440_v58, %v467_v62  ;;  %vm2720_vm14 = vmmov %vm2710_vm0  ;;  %v1093_v58 = vld [vmem:[#allocation4 + $0x58] sm:$0xff] }
 0x29a   :  { %v559_v4 = vsub.f32 0.0, %v482_v59 }
 0x29b   :  { %v443_v0 = vpop.xlane.xlu0 %442 }
 0x29c   :  { %v571_v54 = vsel %vm535_vm2, %v559_v4, 0.0  ;;  %v483_v23 = vsub.f32 %v443_v0, %v469_v27  ;;  %vm2721_vm2 = vmmov %vm2710_vm0  ;;  %v1145_v4 = vadd.f32 %v1144_v51, %v1143_v35  ;;  %v1083_v27 = vld [vmem:[#allocation4 + $0x8] sm:$0xff] }
 0x29d   :  { %v1065_v29 = vadd.f32 %v1053_v16, %v571_v54  ;;  %v981_v43 = vpop.xlane.xlu1 %980  ;;  %v1146_v42 = vsel %vm2721_vm2, %v1128_v24, 0.0  ;;  %vm2736_vm2 = vmmov %vm2710_vm0 }
 0x29e   :  { %v560_v2 = vsub.f32 0.0, %v483_v23  ;;  %v1003_v17 = vsub.f32 0.0, %v981_v43  ;;  %v1147_v23 = vadd.f32 %v1146_v42, %v1145_v4 }
 0x29f   :  { %1078 = vst.msk [vmem:[#allocation3 + $0x40] sm:$0xff] %vm2711_vm3, %v1065_v29  ;;  %v446_v25 = vpop.xlane.xlu0 %445  ;;  %vm2724_vm3 = vmmov %vm2710_vm0  ;;  %v1164_v60 = vld [vmem:[#allocation4] sm:$0xff] }
 0x2a0   :  { %v572_v13 = vsel %vm536_vm11, %v560_v2, 0.0  ;;  %v484_v40 = vsub.f32 %v446_v25, %v471_v37  ;;  %v1100_v28 = vadd.f32 %v1088_v18, %v1003_v17  ;;  %vm2723_vm11 = vmmov %vm2710_vm0 }
 0x2a1   :  { %v1066_v63 = vadd.f32 %v1054_v48, %v572_v13  ;;  %v1089_v48 = vld [vmem:[#allocation4 + $0x38] sm:$0xff] }
 0x2a2   :  { %v561_v3 = vsub.f32 0.0, %v484_v40  ;;  %1112 = vst.msk [vmem:[#allocation4 + $0x30] sm:$0xff] %vm2716_vm8, %v1100_v28  ;;  %vm2730_vm8 = vmmov %vm2710_vm0 }
 0x2a3   :  { %1079 = vst.msk [vmem:[#allocation3 + $0x48] sm:$0xff] %vm2714_vm5, %v1066_v63  ;;  %vm2728_vm5 = vmmov %vm2710_vm0 }
 0x2a4   :  { %v573_v41 = vsel %vm537_vm7, %v561_v3, 0.0  ;;  %vm2726_vm7 = vmmov %vm2710_vm0  ;;  %v1166_v3 = vld [vmem:[#allocation4 + $0x10] sm:$0xff] }
 0x2a5   :  { %v449_v30 = vpop.xlane.xlu0 %448  ;;  %v1067_v12 = vadd.f32 %v1055_v45, %v573_v41 }
 0x2a6   :  { %v485_v19 = vsub.f32 %v449_v30, %v473_v32  ;;  %v1129_v62 = vld [vmem:[#allocation3 + $0x40] sm:$0xff] }
 0x2a7   :  { %1080 = vst.msk [vmem:[#allocation3 + $0x50] sm:$0xff] %vm2718_vm10, %v1067_v12  ;;  %v1148_v0 = vsel %vm2710_vm0, %v1129_v62, 0.0  ;;  %vm2733_vm10 = vmmov %vm2710_vm0 }
 0x2a8   :  { %v975_v7 = vpop.xlane.xlu1 %974  ;;  %v562_v9 = vsub.f32 0.0, %v485_v19  ;;  %v1149_v29 = vadd.f32 %v1148_v0, %v1147_v23  ;;  %v1179_v19 = vsel %vm2733_vm10, %v1166_v3, 0.0 }
 0x2a9   :  { %v1001_v10 = vsub.f32 0.0, %v975_v7 }
 0x2aa   :  { %v574_v49 = vsel %vm538_vm12, %v562_v9, 0.0  ;;  %v1130_v16 = vld [vmem:[#allocation3 + $0x48] sm:$0xff]  ;;  %vm2731_vm12 = vmmov %vm2710_vm0 }
 0x2ab   :  { %v1098_v47 = vadd.f32 %v1086_v39, %v1001_v10  ;;  %v1068_v56 = vadd.f32 %v1056_v57, %v574_v49  ;;  %v1150_v44 = vsel %vm2724_vm3, %v1130_v16, 0.0  ;;  %v1176_v39 = vsel %vm2731_vm12, %v1164_v60, 0.0  ;;  %vm2738_vm3 = vmmov %vm2710_vm0 }
 0x2ac   :  { %v972_v20 = vpop.xlane.xlu1 %971  ;;  %v1151_v31 = vadd.f32 %v1150_v44, %v1149_v29 }
 0x2ad   :  { %1110 = vst.msk [vmem:[#allocation4 + $0x20] sm:$0xff] %vm2720_vm14, %v1098_v47  ;;  %v1000_v36 = vsub.f32 0.0, %v972_v20  ;;  %v996_v59 = vpop.xlane.xlu0 %995  ;;  %vm2735_vm14 = vmmov %vm2710_vm0  ;;  %v1092_v20 = vld [vmem:[#allocation4 + $0x50] sm:$0xff] }
 0x2ae   :  { %v1008_v11 = vsub.f32 0.0, %v996_v59  ;;  %1081 = vst.msk [vmem:[#allocation3 + $0x58] sm:$0xff] %vm2722_vm6, %v1068_v56  ;;  %v1131_v21 = vld [vmem:[#allocation3 + $0x50] sm:$0xff]  ;;  %vm1162_vm6 = vcmask 0  }
 0x2af   :  { %v1097_v52 = vadd.f32 %v1085_v61, %v1000_v36  ;;  %v1152_v37 = vsel %vm2726_vm7, %v1131_v21, 0.0  ;;  %v1170_v36 = vld [vmem:[#allocation4 + $0x30] sm:$0xff] }
 0x2b0   :  { %v966_v33 = vpop.xlane.xlu1 %965  ;;  %v1105_v54 = vadd.f32 %v1093_v58, %v1008_v11  ;;  %v1153_v25 = vadd.f32 %v1152_v37, %v1151_v31  ;;  %v1187_v11 = vsel %vm2738_vm3, %v1170_v36, 0.0 }
 0x2b1   :  { %1109 = vst.msk [vmem:[#allocation4 + $0x18] sm:$0xff] %vm2723_vm11, %v1097_v52  ;;  %v998_v34 = vsub.f32 0.0, %v966_v33  ;;  %vm2737_vm11 = vmmov %vm2710_vm0 }
 0x2b2   :  { %1117 = vst.msk [vmem:[#allocation4 + $0x58] sm:$0xff] %vm2725_vm15, %v1105_v54 }
 0x2b3   :  { %v1095_v14 = vadd.f32 %v1083_v27, %v998_v34 }
 0x2b4   :  { %v984_v2 = vpop.xlane.xlu1 %983  ;;  %v1168_v15 = vld [vmem:[#allocation4 + $0x20] sm:$0xff] }
 0x2b5   :  { %1107 = vst.msk [vmem:[#allocation4 + $0x8] sm:$0xff] %vm2727_vm9, %v1095_v14  ;;  %v1004_v8 = vsub.f32 0.0, %v984_v2  ;;  %v1132_v43 = vld [vmem:[#allocation3 + $0x58] sm:$0xff]  ;;  %v1183_v61 = vsel %vm2736_vm2, %v1168_v15, 0.0 }
 0x2b6   :  { %v1154_v17 = vsel %vm2728_vm5, %v1132_v43, 0.0 }
 0x2b7   :  { %v1101_v18 = vadd.f32 %v1089_v48, %v1004_v8  ;;  %v1155_v55 = vadd.f32 %v1154_v17, %v1153_v25 }
 0x2b8   :  { %v978_v13 = vpop.xlane.xlu1 %977  ;;  %v1167_v30 = vld [vmem:[#allocation4 + $0x18] sm:$0xff] }
 0x2b9   :  { %1113 = vst.msk [vmem:[#allocation4 + $0x38] sm:$0xff] %vm2729_vm13, %v1101_v18  ;;  %v1002_v40 = vsub.f32 0.0, %v978_v13  ;;  %v1156_v63 = vrot.slane %v1155_v55, 4  ;;  %v1181_v57 = vsel %vm2735_vm14, %v1167_v30, 0.0 }
 0x2bb   :  { %v1099_v5 = vadd.f32 %v1087_v6, %v1002_v40  ;;  %v1157_v38 = vadd.f32 %v1156_v63, %v1155_v55 }
 0x2bc   :  { %v987_v28 = vpop.xlane.xlu1 %986  ;;  %v1165_v45 = vld [vmem:[#allocation4 + $0x8] sm:$0xff] }
 0x2bd   :  { %1111 = vst.msk [vmem:[#allocation4 + $0x28] sm:$0xff] %vm2730_vm8, %v1099_v5  ;;  %v1005_v32 = vsub.f32 0.0, %v987_v28  ;;  %v1177_v7 = vsel %vm2732_vm1, %v1165_v45, 0.0  ;;  %v1158_v10 = vrot.slane %v1157_v38, 2 }
 0x2be   :  { %v1178_v1 = vadd.f32 %v1177_v7, %v1176_v39 }
 0x2bf   :  { %v1102_v41 = vadd.f32 %v1090_v50, %v1005_v32  ;;  %v1159_v47 = vadd.f32 %v1158_v10, %v1157_v38 }
 0x2c0   :  { %v990_v22 = vpop.xlane.xlu1 %989  ;;  %v1180_v12 = vadd.f32 %v1179_v19, %v1178_v1  ;;  %v1171_v59 = vld [vmem:[#allocation4 + $0x38] sm:$0xff] }
 0x2c1   :  { %1114 = vst.msk [vmem:[#allocation4 + $0x40] sm:$0xff] %vm2734_vm4, %v1102_v41  ;;  %v1006_v53 = vsub.f32 0.0, %v990_v22  ;;  %v1160_v26 = vrot.slane %v1159_v47, 1 }
 0x2c2   :  { %v1182_v9 = vadd.f32 %v1181_v57, %v1180_v12 }
 0x2c3   :  { %v1103_v24 = vadd.f32 %v1091_v46, %v1006_v53  ;;  %v1161_v56 = vadd.f32 %v1160_v26, %v1159_v47 }
 0x2c4   :  { %v993_v51 = vpop.xlane.xlu1 %992  ;;  %v1169_v49 = vld [vmem:[#allocation4 + $0x28] sm:$0xff]  ;;  %v1184_v62 = vadd.f32 %v1183_v61, %v1182_v9 }
 0x2c5   :  { %1115 = vst.msk [vmem:[#allocation4 + $0x48] sm:$0xff] %vm2710_vm0, %v1103_v24  ;;  %v1007_v35 = vsub.f32 0.0, %v993_v51  ;;  %v1185_v58 = vsel %vm2737_vm11, %v1169_v49, 0.0 }
 0x2c6   :  { %v1186_v42 = vadd.f32 %v1185_v58, %v1184_v62  ;;  %1163 = vst.msk [vmem:[#allocation6] sm:$0x1] %vm1162_vm6, %v1161_v56 }
 0x2c7   :  { %v1104_v52 = vadd.f32 %v1092_v20, %v1007_v35 }
 0x2c8   :  { %1475 = shalt.err (!%p1472_p4)
}
 0x2c9   :  { %1215 = dma.vmem_to_hbm [thread:$0]  %s1213_s7, 16, %s2593_s3, [#allocation7]   ;;  %v1172_v16 = vld [vmem:[#allocation4 + $0x40] sm:$0xff]  ;;  %v1188_v4 = vadd.f32 %v1187_v11, %v1186_v42  ;;  %vm2739_vm15 = vmmov %vm2710_vm0  ;;  %v1175_v14 = vld [vmem:[#allocation4 + $0x58] sm:$0xff] }
 0x2ca   :  { %1116 = vst.msk [vmem:[#allocation4 + $0x50] sm:$0xff] %vm2739_vm15, %v1104_v52  ;;  %vm2740_vm7 = vmmov %vm2710_vm0  ;;  %s1514_s3 = smov [#allocation8]  }
 0x2cb   :  { %v1189_v27 = vsel %vm2740_vm7, %v1171_v59, 0.0  ;;  %vm2741_vm9 = vmmov %vm2710_vm0  ;;  %s1222_s11 = sshll.u32 %s1514_s3, 4  ;;  %s1223_s11 = int_to_ptr.vmem [resolvable:$true] %s1222_s11 }
 0x2cc   :  { %v1190_v33 = vadd.f32 %v1189_v27, %v1188_v4  ;;  %v1191_v0 = vsel %vm2741_vm9, %v1172_v16, 0.0  ;;  %v1173_v34 = vld [vmem:[#allocation4 + $0x48] sm:$0xff]  ;;  %vm2742_vm5 = vmmov %vm2710_vm0  ;;  %s1484_s0 = scalar_lea.vmem %s1223_s11, 16  ;;  %s1488_s12 = scalar_lea.vmem %s1223_s11, 32 }
 0x2cd   :  { %v1193_v23 = vsel %vm2742_vm5, %v1173_v34, 0.0  ;;  %vm2743_vm13 = vmmov %vm2710_vm0  ;;  %p1485_p5 = scmp.ne.s32.totalorder %s1223_s11, %s1484_s0  ;;  %p1489_p6 = scmp.lt.s32.totalorder %s1223_s11, %s1223_s11 }
 0x2ce   :  { %v1192_v54 = vadd.f32 %v1191_v0, %v1190_v33  ;;  %vm2744_vm8 = vmmov %vm2710_vm0  ;;  %p1490_p7 = scmp.lt.s32.totalorder %s1488_s12, %s1484_s0 }
 0x2cf   :  { %v1197_v2 = vsel %vm2744_vm8, %v1175_v14, 0.0 }
 0x2d0   :  { %v1194_v21 = vadd.f32 %v1193_v23, %v1192_v54  ;;  %p1491_p8 = por %p1490_p7, %p1489_p6 }
 0x2d1   :  { %v1174_v44 = vld [vmem:[#allocation4 + $0x50] sm:$0xff] }
 0x2d2   :  { %v1195_v29 = vsel %vm2743_vm13, %v1174_v44, 0.0  ;;  %p1492_p9 = pnand %p1491_p8, %p1485_p5 }
 0x2d3   :  { %v1196_v48 = vadd.f32 %v1195_v29, %v1194_v21 }
 0x2d5   :  { %v1198_v37 = vadd.f32 %v1197_v2, %v1196_v48 }
 0x2d7   :  { %v1199_v8 = vrot.slane %v1198_v37, 4 }
 0x2d9   :  { %v1200_v31 = vadd.f32 %v1199_v8, %v1198_v37 }
 0x2db   :  { %v1201_v18 = vrot.slane %v1200_v31, 2 }
 0x2dd   :  { %v1202_v43 = vadd.f32 %v1201_v18, %v1200_v31 }
 0x2df   :  { %v1203_v25 = vrot.slane %v1202_v43, 1 }
 0x2e1   :  { %v1204_v6 = vadd.f32 %v1203_v25, %v1202_v43 }
 0x2e3   :  { %1205 = vst.msk [vmem:[#allocation8] sm:$0x1] %vm1162_vm6, %v1204_v6 }
 0x2e4   :  { %1495 = shalt.err (!%p1492_p9)
}
 0x2e5   :  { %1225 = dma.vmem_to_hbm [thread:$0]  %s1223_s11, 16, %s2594_s4, [#allocation9]  }
 0x2e6   :  { %1504 = dma.done.wait [#allocation7], 16  }
 0x2e7   :  { %1505 = vsyncadd [#allocation7], 4294967280 }
 0x2e8   :  { %1506 = dma.done.wait [#allocation9], 16  }
 0x2e9   :  { %1507 = vsyncadd [#allocation9], 4294967280 }
 0x2ea   :  { %1232 = vsyncpa [#allocation7], 1 }
 0x2eb   :  { %1233 = vsyncpa [#allocation9], 1 }

</bundles_post_ra>
